<compile_context>
chip_gen: v6e
topology: v6e:2x2x1
jax: 0.10.0
libtpu: 0.0.40
codegen_flags: <defaults>
</compile_context>

<pallas_src>
import jax
import jax.numpy as jnp
from jax import lax
from jax.experimental import pallas as pl
from jax.experimental.pallas import tpu as pltpu


_COMPILER_PARAMS = pltpu.CompilerParams(
    dimension_semantics=("parallel",),
    vmem_limit_bytes=32 * 1024 * 1024,   # explicit: v5e default scoped VMEM is 16 MiB
)


# ---------------------------------------------------------------------------
# Pallas kernels
# ---------------------------------------------------------------------------
def _conv_pool_kernel(cols_ref, w_ref, b_ref, o_ref):
    """Fused conv-as-GEMM + 2x2 max-pool + bias + ReLU.

    cols_ref : (4, TM, K)  im2col columns, one slab per pool phase (bf16)
    w_ref    : (K, 128)    weight matrix, Cout zero-padded to 128 lanes (bf16)
    b_ref    : (1, 128)    bias (f32, zero on padded lanes)
    o_ref    : (TM, 128)   pooled output (bf16, lane-dense)
    """
    nt, tm, _ = cols_ref.shape            # nt == 4 pool phases (static)
    # One stacked LHS -> one MXU matmul (single weight push / drain).
    cols = jnp.concatenate([cols_ref[t] for t in range(nt)], axis=0)   # (4*TM, K)
    y = jnp.dot(cols, w_ref[...], preferred_element_type=jnp.float32)  # (4*TM, 128)
    # 2x2 max-pool = elementwise max of the 4 phase slabs (tile-aligned slices).
    pooled = jnp.maximum(jnp.maximum(y[0 * tm:1 * tm], y[1 * tm:2 * tm]),
                         jnp.maximum(y[2 * tm:3 * tm], y[3 * tm:4 * tm]))
    # Bias + ReLU once, after the max: max_t relu(x_t + b) == relu(max_t(x_t) + b).
    o_ref[...] = jnp.maximum(pooled + b_ref[...], 0.0).astype(o_ref.dtype)


def _fc_head_kernel(x_ref, w1_ref, b1_ref, w2_ref, b2_ref,
                    w3_ref, b3_ref, w4_ref, b4_ref, o_ref):
    """Fused FC head; every hidden/output dim is padded to 128 lanes."""
    h = jnp.dot(x_ref[...], w1_ref[...], preferred_element_type=jnp.float32)
    h = jnp.maximum(h + b1_ref[...], 0.0).astype(jnp.bfloat16)
    h = jnp.dot(h, w2_ref[...], preferred_element_type=jnp.float32)
    h = jnp.maximum(h + b2_ref[...], 0.0).astype(jnp.bfloat16)
    h = jnp.dot(h, w3_ref[...], preferred_element_type=jnp.float32)
    h = jnp.maximum(h + b3_ref[...], 0.0).astype(jnp.bfloat16)
    o = jnp.dot(h, w4_ref[...], preferred_element_type=jnp.float32) + b4_ref[...]
    o_ref[...] = o.astype(o_ref.dtype)    # (TM, 128) f32, lane-dense store


# ---------------------------------------------------------------------------
# Wrappers
# ---------------------------------------------------------------------------
def _pick_tm(m, cap=1024, mult=16):
    """Row-tile size.

    - m <= mult: single full block (keeps the (8,128) block rule satisfied).
    - m <= 2*cap: split into ~2 blocks so v7x's 2 TensorCores both get work.
    - otherwise: largest 128-multiple divisor up to `cap` (fewer grid steps,
      ~0.35us fixed overhead each); partial last block is clipped on store.
    """
    if m <= mult:
        return m
    if m <= 2 * cap:
        half = -(-m // 2)
        return -(-half // mult) * mult
    for tm in (cap, 512, 256, 128):
        if m % tm == 0:
            return tm
    return cap


def _resident(a):
    """Constant-index operand: fetched once, single VMEM buffer."""
    return pl.BlockSpec(a.shape, lambda i: (0, 0), pipeline_mode=pl.Buffered(1))


def conv_pool(cols, w_mat, b_row):
    """cols: (4, M, K) bf16; w_mat: (K, 128) bf16; b_row: (1, 128) f32 -> (M, 128) bf16."""
    p, m, k = cols.shape
    kp, cp = w_mat.shape
    assert p == 4 and k == kp
    tm = _pick_tm(m)
    flops = 2 * 4 * m * k * cp
    bytes_accessed = cols.size * 2 + w_mat.size * 2 + cp * 4 + m * cp * 2
    return pl.pallas_call(
        _conv_pool_kernel,
        out_shape=jax.ShapeDtypeStruct((m, cp), jnp.bfloat16),
        grid=(pl.cdiv(m, tm),),
        in_specs=[
            pl.BlockSpec((4, tm, k), lambda i: (0, i, 0)),
            _resident(w_mat),
            _resident(b_row),
        ],
        out_specs=pl.BlockSpec((tm, cp), lambda i: (i, 0)),
        compiler_params=_COMPILER_PARAMS,
        cost_estimate=pl.CostEstimate(flops=flops, transcendentals=0,
                                      bytes_accessed=bytes_accessed),
    )(cols, w_mat, b_row)


def fc_head(x, pp):
    """x: (M, 2048) bf16 -> (M, 128) f32 (lane-dense; real logits in [:, :10])."""
    m, kin = x.shape
    tm = _pick_tm(m)
    w1, b1 = pp["wf1"], pp["bf1"]
    w2, b2 = pp["wf2"], pp["bf2"]
    w3, b3 = pp["wf3"], pp["bf3"]
    w4, b4 = pp["wf4"], pp["bf4"]
    cout = w4.shape[1]                    # 128 (10 real + zero pad)
    flops = 2 * m * (kin * 128 + 3 * 128 * 128)
    bytes_accessed = (x.size * 2 + (w1.size + w2.size + w3.size + w4.size) * 2
                      + (b1.size + b2.size + b3.size + b4.size) * 4 + m * cout * 4)
    return pl.pallas_call(
        _fc_head_kernel,
        out_shape=jax.ShapeDtypeStruct((m, cout), jnp.float32),
        grid=(pl.cdiv(m, tm),),
        in_specs=[
            pl.BlockSpec((tm, kin), lambda i: (i, 0)),
            _resident(w1), _resident(b1), _resident(w2), _resident(b2),
            _resident(w3), _resident(b3), _resident(w4), _resident(b4),
        ],
        out_specs=pl.BlockSpec((tm, cout), lambda i: (i, 0)),
        compiler_params=_COMPILER_PARAMS,
        cost_estimate=pl.CostEstimate(flops=flops, transcendentals=0,
                                      bytes_accessed=bytes_accessed),
    )(x, w1, b1, w2, b2, w3, b3, w4, b4)


# ---------------------------------------------------------------------------
# Glue: phase-separated im2col (one slab per 2x2 pool tap), bf16 throughout
# ---------------------------------------------------------------------------
def phase_im2col(feat, k, k_pad, c_take=None):
    """feat: (N, H, W, C) -> (4, N*Po*Pw, k_pad) bf16, Po = (H-k+1)//2.

    Slab t=(p,q) holds the im2col rows of the conv-output pixels with spatial
    parity (p, q); the kernel max-reduces the 4 slabs => fused max-pool.
    `c_take` folds a channel slice [0:c_take] into each tap's lax.slice so a
    128-lane-padded feature map never needs a separate narrow-lane relayout."""
    n, h, w, c = feat.shape
    assert (h - k + 1) % 2 == 0 and (w - k + 1) % 2 == 0
    if c_take is None:
        c_take = c
    po, pw = (h - k + 1) // 2, (w - k + 1) // 2
    feat = feat.astype(jnp.bfloat16)
    phases = []
    for p in range(2):
        for q in range(2):
            taps = []
            for dh in range(k):
                for dw in range(k):
                    taps.append(lax.slice(
                        feat,
                        (0, p + dh, q + dw, 0),
                        (n, p + dh + 2 * po - 1, q + dw + 2 * pw - 1, c_take),
                        (1, 2, 2, 1)))                       # (N, Po, Pw, c_take)
            patch = jnp.stack(taps, axis=3)                  # (N, Po, Pw, k*k, c_take)
            phases.append(patch.reshape(n * po * pw, k * k * c_take))
    cols = jnp.stack(phases, axis=0)                         # (4, M, k*k*c_take)
    kk = k * k * c_take
    if k_pad > kk:
        cols = jnp.pad(cols, ((0, 0), (0, 0), (0, k_pad - kk)))
    return cols


# ---------------------------------------------------------------------------
# Parameters (PyTorch-layout synthetic init) and one-time packing
# ---------------------------------------------------------------------------
def init_params(key):
    ks = jax.random.split(key, 12)

    def unif(k, shape, fan_in):
        bound = 1.0 / jnp.sqrt(jnp.float32(fan_in))
        return jax.random.uniform(k, shape, jnp.float32, -bound, bound)

    return {
        "w_c1": unif(ks[0], (10, 1, 5, 5), 25), "b_c1": unif(ks[1], (10,), 25),
        "w_c2": unif(ks[2], (20, 10, 5, 5), 250), "b_c2": unif(ks[3], (20,), 250),
        "w_f1": unif(ks[4], (128, 320), 320), "b_f1": unif(ks[5], (128,), 320),
        "w_f2": unif(ks[6], (64, 128), 128), "b_f2": unif(ks[7], (64,), 128),
        "w_f3": unif(ks[8], (32, 64), 64), "b_f3": unif(ks[9], (32,), 64),
        "w_f4": unif(ks[10], (10, 32), 32), "b_f4": unif(ks[11], (10,), 32),
    }


def prepare_params(p):
    """Pack / pad / cast weights ONCE so the hot path has zero layout ops."""
    bf16, f32 = jnp.bfloat16, jnp.float32

    def conv_pack(w, b, k_pad, c_pad=128):
        co, ci, k, _ = w.shape
        wm = jnp.transpose(w, (2, 3, 1, 0)).reshape(k * k * ci, co)  # (K, Cout)
        wm = jnp.pad(wm, ((0, k_pad - k * k * ci), (0, c_pad - co)))
        bm = jnp.pad(b, (0, c_pad - co)).reshape(1, c_pad)
        return wm.astype(bf16), bm.astype(f32)

    def fc_pack(w, b, in_pad=128, out_pad=128):
        # PyTorch (out, in) -> (in_pad, out_pad), zero-padded => all hidden
        # activations stay full 128-lane layouts (zeros propagate through ReLU).
        out_f, in_f = w.shape
        wm = jnp.zeros((in_pad, out_pad), f32).at[:in_f, :out_f].set(w.T)
        bm = jnp.zeros((1, out_pad), f32).at[0, :out_f].set(b)
        return wm.astype(bf16), bm

    w1, b1 = conv_pack(p["w_c1"], p["b_c1"], k_pad=32)    # (32, 128)
    w2, b2 = conv_pack(p["w_c2"], p["b_c2"], k_pad=256)   # (256, 128)

    # fc1: fold the PyTorch NCHW flatten (c*16 + h*4 + w) into the row order of
    # the padded NHWC flatten ((h*4 + w)*128 + c) so no transpose is needed.
    wf1 = p["w_f1"].reshape(128, 20, 4, 4)                # (out, c, h, w)
    wf1 = jnp.transpose(wf1, (2, 3, 1, 0))                # (h, w, c, out)
    wf1 = jnp.pad(wf1, ((0, 0), (0, 0), (0, 128 - 20), (0, 0)))
    wf1 = wf1.reshape(4 * 4 * 128, 128)                   # (2048, 128)

    wf2, bf2 = fc_pack(p["w_f2"], p["b_f2"])              # 128 -> 128 (64 real)
    wf3, bf3 = fc_pack(p["w_f3"], p["b_f3"])              # 128 -> 128 (32 real)
    wf4, bf4 = fc_pack(p["w_f4"], p["b_f4"])              # 128 -> 128 (10 real)

    return {
        "w1": w1, "b1": b1, "w2": w2, "b2": b2,
        "wf1": wf1.astype(bf16), "bf1": p["b_f1"].reshape(1, -1).astype(f32),
        "wf2": wf2, "bf2": bf2, "wf3": wf3, "bf3": bf3, "wf4": wf4, "bf4": bf4,
    }


# ---------------------------------------------------------------------------
# Full forward pass (matches Net.forward)
# ---------------------------------------------------------------------------
def net_forward(x_nchw, pp):
    n = x_nchw.shape[0]
    # NHWC + bf16 up front so the im2col glue moves half the bytes.
    x = jnp.transpose(x_nchw, (0, 2, 3, 1)).astype(jnp.bfloat16)  # (N, 28, 28, 1)

    # layer1: Conv(1->10, k5) + ReLU + MaxPool(2)  -> (N*144, 128) bf16
    cols1 = phase_im2col(x, k=5, k_pad=32)                        # (4, N*144, 32)
    f1 = conv_pool(cols1, pp["w1"], pp["b1"])
    feat1 = f1.reshape(n, 12, 12, 128)                            # keep 128 lanes

    # layer2: Conv(10->20, k5) + ReLU + MaxPool(2) -> (N*16, 128) bf16
    # Channel slice [:10] is folded into the tap extraction (no relayout pass).
    cols2 = phase_im2col(feat1, k=5, k_pad=256, c_take=10)        # (4, N*16, 256)
    f2 = conv_pool(cols2, pp["w2"], pp["b2"])

    # fc head: flatten directly (permutation + pad folded into wf1 at init);
    # kernel stores lane-dense (N, 128) f32, real logits are the first 10 lanes.
    flat = f2.reshape(n, 4 * 4 * 128)                             # (N, 2048) bf16
    return fc_head(flat, pp)[:, :10]                              # (N, 10) f32


# ---------------------------------------------------------------------------
if __name__ == "__main__":
    key = jax.random.PRNGKey(0)
    k_x, k_p = jax.random.split(key)

    batch = 2  # FC input of 320 implies 28x28 single-channel images
    x = jax.random.normal(k_x, (batch, 1, 28, 28), dtype=jnp.float32)
    params = prepare_params(init_params(k_p))

    fwd = jax.jit(net_forward)
    out = jax.block_until_ready(fwd(x, params))

    assert out.shape == (batch, 10), out.shape
    assert out.dtype == jnp.float32, out.dtype
    print("KERNEL_OK")
</pallas_src>

<mosaic_0001>
module attributes {stable_mosaic.version = 11 : i64} {
  func.func @_conv_pool_kernel(%arg0: i32, %arg1: memref<4x144x32xbf16, #tpu.memory_space<vmem>>, %arg2: memref<32x128xbf16, #tpu.memory_space<vmem>>, %arg3: memref<1x128xf32, #tpu.memory_space<vmem>>, %arg4: memref<144x128xbf16, #tpu.memory_space<vmem>>) attributes {dimension_semantics = [#tpu.dimension_semantics<parallel>], iteration_bounds = array<i64: 2>, scalar_prefetch = 0 : i64, scratch_operands = 0 : i64, tpu.core_type = #tpu.core_type<tc>, window_params = [{transform_indices = @transform_0, window_bounds = array<i64: 4, 144, 32>}, {pipeline_mode = #tpu.pipeline_mode<synchronous>, transform_indices = @transform_1, window_bounds = array<i64: 32, 128>}, {pipeline_mode = #tpu.pipeline_mode<synchronous>, transform_indices = @transform_2, window_bounds = array<i64: 1, 128>}, {transform_indices = @transform_3, window_bounds = array<i64: 144, 128>}]} {
    %c0 = arith.constant 0 : index
    %c0_0 = arith.constant 0 : index
    %c0_1 = arith.constant 0 : index
    %0 = vector.load %arg1[%c0, %c0_0, %c0_1] : memref<4x144x32xbf16, #tpu.memory_space<vmem>>, vector<1x144x32xbf16>
    %1 = vector.shape_cast %0 : vector<1x144x32xbf16> to vector<144x32xbf16>
    %c1 = arith.constant 1 : index
    %c0_2 = arith.constant 0 : index
    %c0_3 = arith.constant 0 : index
    %2 = vector.load %arg1[%c1, %c0_2, %c0_3] : memref<4x144x32xbf16, #tpu.memory_space<vmem>>, vector<1x144x32xbf16>
    %3 = vector.shape_cast %2 : vector<1x144x32xbf16> to vector<144x32xbf16>
    %c2 = arith.constant 2 : index
    %c0_4 = arith.constant 0 : index
    %c0_5 = arith.constant 0 : index
    %4 = vector.load %arg1[%c2, %c0_4, %c0_5] : memref<4x144x32xbf16, #tpu.memory_space<vmem>>, vector<1x144x32xbf16>
    %5 = vector.shape_cast %4 : vector<1x144x32xbf16> to vector<144x32xbf16>
    %c3 = arith.constant 3 : index
    %c0_6 = arith.constant 0 : index
    %c0_7 = arith.constant 0 : index
    %6 = vector.load %arg1[%c3, %c0_6, %c0_7] : memref<4x144x32xbf16, #tpu.memory_space<vmem>>, vector<1x144x32xbf16>
    %7 = vector.shape_cast %6 : vector<1x144x32xbf16> to vector<144x32xbf16>
    %8 = tpu.concatenate %1, %3, %5, %7 in 0 : vector<144x32xbf16>, vector<144x32xbf16>, vector<144x32xbf16>, vector<144x32xbf16> -> vector<576x32xbf16>
    %c0_8 = arith.constant 0 : index
    %c0_9 = arith.constant 0 : index
    %9 = vector.load %arg2[%c0_8, %c0_9] : memref<32x128xbf16, #tpu.memory_space<vmem>>, vector<32x128xbf16>
    %cst = arith.constant dense<0.000000e+00> : vector<576x128xf32>
    %10 = tpu.matmul %8, %9, %cst {dimension_numbers = #tpu.dot_dimension_numbers<[1], [0], [0], [1], [0, 0, 1, 1], [], []>} : vector<576x32xbf16>, vector<32x128xbf16>, vector<576x128xf32> -> vector<576x128xf32>
    %11 = vector.extract_strided_slice %10 {offsets = [0, 0], sizes = [144, 128], strides = [1, 1]} : vector<576x128xf32> to vector<144x128xf32>
    %12 = vector.extract_strided_slice %10 {offsets = [144, 0], sizes = [144, 128], strides = [1, 1]} : vector<576x128xf32> to vector<144x128xf32>
    %13 = arith.maximumf %11, %12 : vector<144x128xf32>
    %14 = vector.extract_strided_slice %10 {offsets = [288, 0], sizes = [144, 128], strides = [1, 1]} : vector<576x128xf32> to vector<144x128xf32>
    %15 = vector.extract_strided_slice %10 {offsets = [432, 0], sizes = [144, 128], strides = [1, 1]} : vector<576x128xf32> to vector<144x128xf32>
    %16 = arith.maximumf %14, %15 : vector<144x128xf32>
    %17 = arith.maximumf %13, %16 : vector<144x128xf32>
    %c0_10 = arith.constant 0 : index
    %c0_11 = arith.constant 0 : index
    %18 = vector.load %arg3[%c0_10, %c0_11] : memref<1x128xf32, #tpu.memory_space<vmem>>, vector<1x128xf32>
    %19 = vector.broadcast %18 : vector<1x128xf32> to vector<144x128xf32>
    %20 = arith.addf %17, %19 : vector<144x128xf32>
    %cst_12 = arith.constant 0.000000e+00 : f32
    %21 = vector.broadcast %cst_12 : f32 to vector<144x128xf32>
    %22 = arith.maximumf %20, %21 : vector<144x128xf32>
    %23 = arith.truncf %22 : vector<144x128xf32> to vector<144x128xbf16>
    %c0_13 = arith.constant 0 : index
    %c0_14 = arith.constant 0 : index
    %24 = vector.load %arg4[%c0_13, %c0_14] : memref<144x128xbf16, #tpu.memory_space<vmem>>, vector<144x128xbf16>
    tpu.vector_store %arg4[%c0_13, %c0_14], %23 {strides = array<i32>} : memref<144x128xbf16, #tpu.memory_space<vmem>>, vector<144x128xbf16>,
    return
  }
  func.func @transform_0(%arg0: i32) -> (i32, i32, i32) {
    %c0_i32 = arith.constant 0 : i32
    %c0_i32_0 = arith.constant 0 : i32
    %c0_i32_1 = arith.constant 0 : i32
    return %c0_i32, %arg0, %c0_i32_0 : i32, i32, i32
  }
  func.func @transform_1(%arg0: i32) -> (i32, i32) {
    %c0_i32 = arith.constant 0 : i32
    %c0_i32_0 = arith.constant 0 : i32
    %c0_i32_1 = arith.constant 0 : i32
    return %c0_i32, %c0_i32_0 : i32, i32
  }
  func.func @transform_2(%arg0: i32) -> (i32, i32) {
    %c0_i32 = arith.constant 0 : i32
    %c0_i32_0 = arith.constant 0 : i32
    %c0_i32_1 = arith.constant 0 : i32
    return %c0_i32, %c0_i32_0 : i32, i32
  }
  func.func @transform_3(%arg0: i32) -> (i32, i32) {
    %c0_i32 = arith.constant 0 : i32
    %c0_i32_0 = arith.constant 0 : i32
    return %arg0, %c0_i32 : i32, i32
  }
}

module attributes {stable_mosaic.version = 11 : i64} {
  func.func @_conv_pool_kernel(%arg0: i32, %arg1: memref<4x16x256xbf16, #tpu.memory_space<vmem>>, %arg2: memref<256x128xbf16, #tpu.memory_space<vmem>>, %arg3: memref<1x128xf32, #tpu.memory_space<vmem>>, %arg4: memref<16x128xbf16, #tpu.memory_space<vmem>>) attributes {dimension_semantics = [#tpu.dimension_semantics<parallel>], iteration_bounds = array<i64: 2>, scalar_prefetch = 0 : i64, scratch_operands = 0 : i64, tpu.core_type = #tpu.core_type<tc>, window_params = [{transform_indices = @transform_0, window_bounds = array<i64: 4, 16, 256>}, {pipeline_mode = #tpu.pipeline_mode<synchronous>, transform_indices = @transform_1, window_bounds = array<i64: 256, 128>}, {pipeline_mode = #tpu.pipeline_mode<synchronous>, transform_indices = @transform_2, window_bounds = array<i64: 1, 128>}, {transform_indices = @transform_3, window_bounds = array<i64: 16, 128>}]} {
    %c0 = arith.constant 0 : index
    %c0_0 = arith.constant 0 : index
    %c0_1 = arith.constant 0 : index
    %0 = vector.load %arg1[%c0, %c0_0, %c0_1] : memref<4x16x256xbf16, #tpu.memory_space<vmem>>, vector<1x16x256xbf16>
    %1 = vector.shape_cast %0 : vector<1x16x256xbf16> to vector<16x256xbf16>
    %c1 = arith.constant 1 : index
    %c0_2 = arith.constant 0 : index
    %c0_3 = arith.constant 0 : index
    %2 = vector.load %arg1[%c1, %c0_2, %c0_3] : memref<4x16x256xbf16, #tpu.memory_space<vmem>>, vector<1x16x256xbf16>
    %3 = vector.shape_cast %2 : vector<1x16x256xbf16> to vector<16x256xbf16>
    %c2 = arith.constant 2 : index
    %c0_4 = arith.constant 0 : index
    %c0_5 = arith.constant 0 : index
    %4 = vector.load %arg1[%c2, %c0_4, %c0_5] : memref<4x16x256xbf16, #tpu.memory_space<vmem>>, vector<1x16x256xbf16>
    %5 = vector.shape_cast %4 : vector<1x16x256xbf16> to vector<16x256xbf16>
    %c3 = arith.constant 3 : index
    %c0_6 = arith.constant 0 : index
    %c0_7 = arith.constant 0 : index
    %6 = vector.load %arg1[%c3, %c0_6, %c0_7] : memref<4x16x256xbf16, #tpu.memory_space<vmem>>, vector<1x16x256xbf16>
    %7 = vector.shape_cast %6 : vector<1x16x256xbf16> to vector<16x256xbf16>
    %8 = tpu.concatenate %1, %3, %5, %7 in 0 : vector<16x256xbf16>, vector<16x256xbf16>, vector<16x256xbf16>, vector<16x256xbf16> -> vector<64x256xbf16>
    %c0_8 = arith.constant 0 : index
    %c0_9 = arith.constant 0 : index
    %9 = vector.load %arg2[%c0_8, %c0_9] : memref<256x128xbf16, #tpu.memory_space<vmem>>, vector<256x128xbf16>
    %cst = arith.constant dense<0.000000e+00> : vector<64x128xf32>
    %10 = tpu.matmul %8, %9, %cst {dimension_numbers = #tpu.dot_dimension_numbers<[1], [0], [0], [1], [0, 0, 1, 1], [], []>} : vector<64x256xbf16>, vector<256x128xbf16>, vector<64x128xf32> -> vector<64x128xf32>
    %11 = vector.extract_strided_slice %10 {offsets = [0, 0], sizes = [16, 128], strides = [1, 1]} : vector<64x128xf32> to vector<16x128xf32>
    %12 = vector.extract_strided_slice %10 {offsets = [16, 0], sizes = [16, 128], strides = [1, 1]} : vector<64x128xf32> to vector<16x128xf32>
    %13 = arith.maximumf %11, %12 : vector<16x128xf32>
    %14 = vector.extract_strided_slice %10 {offsets = [32, 0], sizes = [16, 128], strides = [1, 1]} : vector<64x128xf32> to vector<16x128xf32>
    %15 = vector.extract_strided_slice %10 {offsets = [48, 0], sizes = [16, 128], strides = [1, 1]} : vector<64x128xf32> to vector<16x128xf32>
    %16 = arith.maximumf %14, %15 : vector<16x128xf32>
    %17 = arith.maximumf %13, %16 : vector<16x128xf32>
    %c0_10 = arith.constant 0 : index
    %c0_11 = arith.constant 0 : index
    %18 = vector.load %arg3[%c0_10, %c0_11] : memref<1x128xf32, #tpu.memory_space<vmem>>, vector<1x128xf32>
    %19 = vector.broadcast %18 : vector<1x128xf32> to vector<16x128xf32>
    %20 = arith.addf %17, %19 : vector<16x128xf32>
    %cst_12 = arith.constant 0.000000e+00 : f32
    %21 = vector.broadcast %cst_12 : f32 to vector<16x128xf32>
    %22 = arith.maximumf %20, %21 : vector<16x128xf32>
    %23 = arith.truncf %22 : vector<16x128xf32> to vector<16x128xbf16>
    %c0_13 = arith.constant 0 : index
    %c0_14 = arith.constant 0 : index
    %24 = vector.load %arg4[%c0_13, %c0_14] : memref<16x128xbf16, #tpu.memory_space<vmem>>, vector<16x128xbf16>
    tpu.vector_store %arg4[%c0_13, %c0_14], %23 {strides = array<i32>} : memref<16x128xbf16, #tpu.memory_space<vmem>>, vector<16x128xbf16>,
    return
  }
  func.func @transform_0(%arg0: i32) -> (i32, i32, i32) {
    %c0_i32 = arith.constant 0 : i32
    %c0_i32_0 = arith.constant 0 : i32
    %c0_i32_1 = arith.constant 0 : i32
    return %c0_i32, %arg0, %c0_i32_0 : i32, i32, i32
  }
  func.func @transform_1(%arg0: i32) -> (i32, i32) {
    %c0_i32 = arith.constant 0 : i32
    %c0_i32_0 = arith.constant 0 : i32
    %c0_i32_1 = arith.constant 0 : i32
    return %c0_i32, %c0_i32_0 : i32, i32
  }
  func.func @transform_2(%arg0: i32) -> (i32, i32) {
    %c0_i32 = arith.constant 0 : i32
    %c0_i32_0 = arith.constant 0 : i32
    %c0_i32_1 = arith.constant 0 : i32
    return %c0_i32, %c0_i32_0 : i32, i32
  }
  func.func @transform_3(%arg0: i32) -> (i32, i32) {
    %c0_i32 = arith.constant 0 : i32
    %c0_i32_0 = arith.constant 0 : i32
    return %arg0, %c0_i32 : i32, i32
  }
}

module attributes {stable_mosaic.version = 11 : i64} {
  func.func @_fc_head_kernel(%arg0: i32, %arg1: memref<2x2048xbf16, #tpu.memory_space<vmem>>, %arg2: memref<2048x128xbf16, #tpu.memory_space<vmem>>, %arg3: memref<1x128xf32, #tpu.memory_space<vmem>>, %arg4: memref<128x128xbf16, #tpu.memory_space<vmem>>, %arg5: memref<1x128xf32, #tpu.memory_space<vmem>>, %arg6: memref<128x128xbf16, #tpu.memory_space<vmem>>, %arg7: memref<1x128xf32, #tpu.memory_space<vmem>>, %arg8: memref<128x128xbf16, #tpu.memory_space<vmem>>, %arg9: memref<1x128xf32, #tpu.memory_space<vmem>>, %arg10: memref<2x128xf32, #tpu.memory_space<vmem>>) attributes {dimension_semantics = [#tpu.dimension_semantics<parallel>], iteration_bounds = array<i64: 1>, scalar_prefetch = 0 : i64, scratch_operands = 0 : i64, tpu.core_type = #tpu.core_type<tc>, window_params = [{transform_indices = @transform_0, window_bounds = array<i64: 2, 2048>}, {pipeline_mode = #tpu.pipeline_mode<synchronous>, transform_indices = @transform_1, window_bounds = array<i64: 2048, 128>}, {pipeline_mode = #tpu.pipeline_mode<synchronous>, transform_indices = @transform_2, window_bounds = array<i64: 1, 128>}, {pipeline_mode = #tpu.pipeline_mode<synchronous>, transform_indices = @transform_3, window_bounds = array<i64: 128, 128>}, {pipeline_mode = #tpu.pipeline_mode<synchronous>, transform_indices = @transform_4, window_bounds = array<i64: 1, 128>}, {pipeline_mode = #tpu.pipeline_mode<synchronous>, transform_indices = @transform_5, window_bounds = array<i64: 128, 128>}, {pipeline_mode = #tpu.pipeline_mode<synchronous>, transform_indices = @transform_6, window_bounds = array<i64: 1, 128>}, {pipeline_mode = #tpu.pipeline_mode<synchronous>, transform_indices = @transform_7, window_bounds = array<i64: 128, 128>}, {pipeline_mode = #tpu.pipeline_mode<synchronous>, transform_indices = @transform_8, window_bounds = array<i64: 1, 128>}, {transform_indices = @transform_9, window_bounds = array<i64: 2, 128>}]} {
    %c0 = arith.constant 0 : index
    %c0_0 = arith.constant 0 : index
    %0 = vector.load %arg1[%c0, %c0_0] : memref<2x2048xbf16, #tpu.memory_space<vmem>>, vector<2x2048xbf16>
    %c0_1 = arith.constant 0 : index
    %c0_2 = arith.constant 0 : index
    %1 = vector.load %arg2[%c0_1, %c0_2] : memref<2048x128xbf16, #tpu.memory_space<vmem>>, vector<2048x128xbf16>
    %cst = arith.constant dense<0.000000e+00> : vector<2x128xf32>
    %2 = tpu.matmul %0, %1, %cst {dimension_numbers = #tpu.dot_dimension_numbers<[1], [0], [0], [1], [0, 0, 1, 1], [], []>} : vector<2x2048xbf16>, vector<2048x128xbf16>, vector<2x128xf32> -> vector<2x128xf32>
    %c0_3 = arith.constant 0 : index
    %c0_4 = arith.constant 0 : index
    %3 = vector.load %arg3[%c0_3, %c0_4] : memref<1x128xf32, #tpu.memory_space<vmem>>, vector<1x128xf32>
    %4 = vector.broadcast %3 : vector<1x128xf32> to vector<2x128xf32>
    %5 = arith.addf %2, %4 : vector<2x128xf32>
    %cst_5 = arith.constant 0.000000e+00 : f32
    %6 = vector.broadcast %cst_5 : f32 to vector<2x128xf32>
    %7 = arith.maximumf %5, %6 : vector<2x128xf32>
    %8 = arith.truncf %7 : vector<2x128xf32> to vector<2x128xbf16>
    %c0_6 = arith.constant 0 : index
    %c0_7 = arith.constant 0 : index
    %9 = vector.load %arg4[%c0_6, %c0_7] : memref<128x128xbf16, #tpu.memory_space<vmem>>, vector<128x128xbf16>
    %cst_8 = arith.constant dense<0.000000e+00> : vector<2x128xf32>
    %10 = tpu.matmul %8, %9, %cst_8 {dimension_numbers = #tpu.dot_dimension_numbers<[1], [0], [0], [1], [0, 0, 1, 1], [], []>} : vector<2x128xbf16>, vector<128x128xbf16>, vector<2x128xf32> -> vector<2x128xf32>
    %c0_9 = arith.constant 0 : index
    %c0_10 = arith.constant 0 : index
    %11 = vector.load %arg5[%c0_9, %c0_10] : memref<1x128xf32, #tpu.memory_space<vmem>>, vector<1x128xf32>
    %12 = vector.broadcast %11 : vector<1x128xf32> to vector<2x128xf32>
    %13 = arith.addf %10, %12 : vector<2x128xf32>
    %cst_11 = arith.constant 0.000000e+00 : f32
    %14 = vector.broadcast %cst_11 : f32 to vector<2x128xf32>
    %15 = arith.maximumf %13, %14 : vector<2x128xf32>
    %16 = arith.truncf %15 : vector<2x128xf32> to vector<2x128xbf16>
    %c0_12 = arith.constant 0 : index
    %c0_13 = arith.constant 0 : index
    %17 = vector.load %arg6[%c0_12, %c0_13] : memref<128x128xbf16, #tpu.memory_space<vmem>>, vector<128x128xbf16>
    %cst_14 = arith.constant dense<0.000000e+00> : vector<2x128xf32>
    %18 = tpu.matmul %16, %17, %cst_14 {dimension_numbers = #tpu.dot_dimension_numbers<[1], [0], [0], [1], [0, 0, 1, 1], [], []>} : vector<2x128xbf16>, vector<128x128xbf16>, vector<2x128xf32> -> vector<2x128xf32>
    %c0_15 = arith.constant 0 : index
    %c0_16 = arith.constant 0 : index
    %19 = vector.load %arg7[%c0_15, %c0_16] : memref<1x128xf32, #tpu.memory_space<vmem>>, vector<1x128xf32>
    %20 = vector.broadcast %19 : vector<1x128xf32> to vector<2x128xf32>
    %21 = arith.addf %18, %20 : vector<2x128xf32>
    %cst_17 = arith.constant 0.000000e+00 : f32
    %22 = vector.broadcast %cst_17 : f32 to vector<2x128xf32>
    %23 = arith.maximumf %21, %22 : vector<2x128xf32>
    %24 = arith.truncf %23 : vector<2x128xf32> to vector<2x128xbf16>
    %c0_18 = arith.constant 0 : index
    %c0_19 = arith.constant 0 : index
    %25 = vector.load %arg8[%c0_18, %c0_19] : memref<128x128xbf16, #tpu.memory_space<vmem>>, vector<128x128xbf16>
    %cst_20 = arith.constant dense<0.000000e+00> : vector<2x128xf32>
    %26 = tpu.matmul %24, %25, %cst_20 {dimension_numbers = #tpu.dot_dimension_numbers<[1], [0], [0], [1], [0, 0, 1, 1], [], []>} : vector<2x128xbf16>, vector<128x128xbf16>, vector<2x128xf32> -> vector<2x128xf32>
    %c0_21 = arith.constant 0 : index
    %c0_22 = arith.constant 0 : index
    %27 = vector.load %arg9[%c0_21, %c0_22] : memref<1x128xf32, #tpu.memory_space<vmem>>, vector<1x128xf32>
    %28 = vector.broadcast %27 : vector<1x128xf32> to vector<2x128xf32>
    %29 = arith.addf %26, %28 : vector<2x128xf32>
    %c0_23 = arith.constant 0 : index
    %c0_24 = arith.constant 0 : index
    %30 = vector.load %arg10[%c0_23, %c0_24] : memref<2x128xf32, #tpu.memory_space<vmem>>, vector<2x128xf32>
    tpu.vector_store %arg10[%c0_23, %c0_24], %29 {strides = array<i32>} : memref<2x128xf32, #tpu.memory_space<vmem>>, vector<2x128xf32>,
    return
  }
  func.func @transform_0(%arg0: i32) -> (i32, i32) {
    %c0_i32 = arith.constant 0 : i32
    %c0_i32_0 = arith.constant 0 : i32
    return %arg0, %c0_i32 : i32, i32
  }
  func.func @transform_1(%arg0: i32) -> (i32, i32) {
    %c0_i32 = arith.constant 0 : i32
    %c0_i32_0 = arith.constant 0 : i32
    %c0_i32_1 = arith.constant 0 : i32
    return %c0_i32, %c0_i32_0 : i32, i32
  }
  func.func @transform_2(%arg0: i32) -> (i32, i32) {
    %c0_i32 = arith.constant 0 : i32
    %c0_i32_0 = arith.constant 0 : i32
    %c0_i32_1 = arith.constant 0 : i32
    return %c0_i32, %c0_i32_0 : i32, i32
  }
  func.func @transform_3(%arg0: i32) -> (i32, i32) {
    %c0_i32 = arith.constant 0 : i32
    %c0_i32_0 = arith.constant 0 : i32
    %c0_i32_1 = arith.constant 0 : i32
    return %c0_i32, %c0_i32_0 : i32, i32
  }
  func.func @transform_4(%arg0: i32) -> (i32, i32) {
    %c0_i32 = arith.constant 0 : i32
    %c0_i32_0 = arith.constant 0 : i32
    %c0_i32_1 = arith.constant 0 : i32
    return %c0_i32, %c0_i32_0 : i32, i32
  }
  func.func @transform_5(%arg0: i32) -> (i32, i32) {
    %c0_i32 = arith.constant 0 : i32
    %c0_i32_0 = arith.constant 0 : i32
    %c0_i32_1 = arith.constant 0 : i32
    return %c0_i32, %c0_i32_0 : i32, i32
  }
  func.func @transform_6(%arg0: i32) -> (i32, i32) {
    %c0_i32 = arith.constant 0 : i32
    %c0_i32_0 = arith.constant 0 : i32
    %c0_i32_1 = arith.constant 0 : i32
    return %c0_i32, %c0_i32_0 : i32, i32
  }
  func.func @transform_7(%arg0: i32) -> (i32, i32) {
    %c0_i32 = arith.constant 0 : i32
    %c0_i32_0 = arith.constant 0 : i32
    %c0_i32_1 = arith.constant 0 : i32
    return %c0_i32, %c0_i32_0 : i32, i32
  }
  func.func @transform_8(%arg0: i32) -> (i32, i32) {
    %c0_i32 = arith.constant 0 : i32
    %c0_i32_0 = arith.constant 0 : i32
    %c0_i32_1 = arith.constant 0 : i32
    return %c0_i32, %c0_i32_0 : i32, i32
  }
  func.func @transform_9(%arg0: i32) -> (i32, i32) {
    %c0_i32 = arith.constant 0 : i32
    %c0_i32_0 = arith.constant 0 : i32
    return %arg0, %c0_i32 : i32, i32
  }
}

</mosaic_0001>

<bundles_post_ra>
// kernel: net_forward.3
= control target key start
LH: loop header
LB: loop body
LE: loop exit
PB: predicated region body
PF: predicated region fallthrough
CT: control target
= control target key end

     0   :  { %s1906_s12 = smov 0   ;;  %s1908_s13 = smov 0   ;;  %s2238_s0 = inlined_call_operand.vmem [shape: bf16[4,288,32], index: 0, kind: input, shape index: {}]   ;;  %s2239_s1 = inlined_call_operand.vmem [shape: bf16[32,128], index: 1, kind: input, shape index: {}]   ;;  %s2240_s2 = inlined_call_operand.vmem [shape: f32[1,128], index: 2, kind: input, shape index: {}]   ;;  %s2241_s3 = inlined_call_operand.vmem [shape: bf16[288,128], index: 3, kind: output, shape index: {}]  }
   0x1   :  { %s1910_s14 = smov 0  }
   0x2 LB: > { %s1452_s15 = sadd.s32 4294967295, %s1884_s14   ;;  %s1923_s16 = sadd.s32 1, %s1884_s14   ;;  %s1884_s14 = sphi %s1910_s14, %s2244_s14   ;;  %s1880_s13 = sphi %s1908_s13, %s2243_s13   ;;  %s1876_s12 = sphi %s1906_s12, %s2242_s12  }
   0x3   : > { %s17_s17 = ssub.s32 %s1884_s14, %s1923_s16  ;;  %s20_s18 = sadd.s32 1, %s1880_s13 }
   0x4   : > { %p18_p0 = scmp.eq.s32.totalorder %s17_s17, 0  ;;  %p27_p1 = scmp.ne.s32.totalorder %s1880_s13, %s1876_s12 }
   0x5   : > { %p28_p2 = scmp.eq.s32.totalorder %s1884_s14, 0  ;;  %p1455_p4 = scmp.ge.s32.totalorder %s1884_s14, 2 }
   0x6   : > { %s1932_s19 = scalar_select %p18_p0, %s1880_s13, %s20_s18  }
   0x7   : > { %p29_p3 = por %p28_p2, %p27_p1  ;;  %127 = sbr.rel (%p1455_p4) target bundleno = 35 (0x23), region = 24 }
   0xc   : > { %130 = sbr.rel (!%p29_p3) target bundleno = 35 (0x23), region = 28  ;;  %s132_s20 = sand.u32 (%p29_p3), 1, %s1880_s13  }
   0xd   : > { %s1608_s21 = smul.u32 (%p29_p3), 72, %s1884_s14 }
   0xe   : > { %s1798_s22 = smul.u32 (%p29_p3), 288, %s132_s20 }
   0xf   : > { %s1940_s25 = scalar_lea.vmem (%p29_p3), %s2238_s0, %s1608_s21 }
  0x10   : > { %v154_v0 = vld [vmem:[%s1940_s25] sm:$0xff] (%p29_p3)   ;;  %v158_v1 = vld [vmem:[%s1940_s25 + $0x8] sm:$0xff] (%p29_p3)   ;;  %v162_v2 = vld [vmem:[%s1940_s25 + $0x10] sm:$0xff] (%p29_p3)   ;;  %s1945_s26 = scalar_lea.vmem (%p29_p3), [#allocation2], %s1798_s22 }
  0x11   : > { %155 = vst [vmem:[%s1945_s26] sm:$0xff] %v154_v0   ;;  %159 = vst [vmem:[%s1945_s26 + $0x8] sm:$0xff] %v158_v1   ;;  %v166_v3 = vld [vmem:[%s1940_s25 + $0x18] sm:$0xff]   ;;  %v170_v4 = vld [vmem:[%s1940_s25 + $0x20] sm:$0xff]  }
  0x12   : > { %163 = vst [vmem:[%s1945_s26 + $0x10] sm:$0xff] %v162_v2   ;;  %v174_v5 = vld [vmem:[%s1940_s25 + $0x28] sm:$0xff]   ;;  %167 = vst [vmem:[%s1945_s26 + $0x18] sm:$0xff] %v166_v3   ;;  %v178_v6 = vld [vmem:[%s1940_s25 + $0x30] sm:$0xff]  }
  0x13   : > { %171 = vst [vmem:[%s1945_s26 + $0x20] sm:$0xff] %v170_v4   ;;  %175 = vst [vmem:[%s1945_s26 + $0x28] sm:$0xff] %v174_v5   ;;  %v182_v7 = vld [vmem:[%s1940_s25 + $0x38] sm:$0xff]   ;;  %v186_v8 = vld [vmem:[%s1940_s25 + $0x40] sm:$0xff]  }
  0x14   : > { %179 = vst [vmem:[%s1945_s26 + $0x30] sm:$0xff] %v178_v6   ;;  %183 = vst [vmem:[%s1945_s26 + $0x38] sm:$0xff] %v182_v7   ;;  %v190_v9 = vld [vmem:[%s1940_s25 + $0x90] sm:$0xff]   ;;  %v194_v10 = vld [vmem:[%s1940_s25 + $0x98] sm:$0xff]  }
  0x15   : > { %187 = vst [vmem:[%s1945_s26 + $0x40] sm:$0xff] %v186_v8   ;;  %v198_v11 = vld [vmem:[%s1940_s25 + $0xa0] sm:$0xff]   ;;  %191 = vst [vmem:[%s1945_s26 + $0x48] sm:$0xff] %v190_v9   ;;  %v202_v12 = vld [vmem:[%s1940_s25 + $0xa8] sm:$0xff]  }
  0x16   : > { %195 = vst [vmem:[%s1945_s26 + $0x50] sm:$0xff] %v194_v10   ;;  %199 = vst [vmem:[%s1945_s26 + $0x58] sm:$0xff] %v198_v11   ;;  %v206_v13 = vld [vmem:[%s1940_s25 + $0xb0] sm:$0xff]   ;;  %v210_v14 = vld [vmem:[%s1940_s25 + $0xb8] sm:$0xff]  }
  0x17   : > { %203 = vst [vmem:[%s1945_s26 + $0x60] sm:$0xff] %v202_v12   ;;  %207 = vst [vmem:[%s1945_s26 + $0x68] sm:$0xff] %v206_v13   ;;  %v214_v15 = vld [vmem:[%s1940_s25 + $0xc0] sm:$0xff]   ;;  %v218_v16 = vld [vmem:[%s1940_s25 + $0xc8] sm:$0xff]  }
  0x18   : > { %211 = vst [vmem:[%s1945_s26 + $0x70] sm:$0xff] %v210_v14   ;;  %v222_v17 = vld [vmem:[%s1940_s25 + $0xd0] sm:$0xff]   ;;  %215 = vst [vmem:[%s1945_s26 + $0x78] sm:$0xff] %v214_v15   ;;  %v226_v18 = vld [vmem:[%s1940_s25 + $0x120] sm:$0xff]  }
  0x19   : > { %219 = vst [vmem:[%s1945_s26 + $0x80] sm:$0xff] %v218_v16   ;;  %223 = vst [vmem:[%s1945_s26 + $0x88] sm:$0xff] %v222_v17   ;;  %v230_v19 = vld [vmem:[%s1940_s25 + $0x128] sm:$0xff]   ;;  %v234_v20 = vld [vmem:[%s1940_s25 + $0x130] sm:$0xff]  }
  0x1a   : > { %227 = vst [vmem:[%s1945_s26 + $0x90] sm:$0xff] %v226_v18   ;;  %231 = vst [vmem:[%s1945_s26 + $0x98] sm:$0xff] %v230_v19   ;;  %v238_v21 = vld [vmem:[%s1940_s25 + $0x138] sm:$0xff]   ;;  %v242_v22 = vld [vmem:[%s1940_s25 + $0x140] sm:$0xff]  }
  0x1b   : > { %235 = vst [vmem:[%s1945_s26 + $0xa0] sm:$0xff] %v234_v20   ;;  %v246_v23 = vld [vmem:[%s1940_s25 + $0x148] sm:$0xff]   ;;  %239 = vst [vmem:[%s1945_s26 + $0xa8] sm:$0xff] %v238_v21   ;;  %v250_v24 = vld [vmem:[%s1940_s25 + $0x150] sm:$0xff]  }
  0x1c   : > { %243 = vst [vmem:[%s1945_s26 + $0xb0] sm:$0xff] %v242_v22   ;;  %247 = vst [vmem:[%s1945_s26 + $0xb8] sm:$0xff] %v246_v23   ;;  %v254_v25 = vld [vmem:[%s1940_s25 + $0x158] sm:$0xff]   ;;  %v258_v26 = vld [vmem:[%s1940_s25 + $0x160] sm:$0xff]  }
  0x1d   : > { %251 = vst [vmem:[%s1945_s26 + $0xc0] sm:$0xff] %v250_v24   ;;  %255 = vst [vmem:[%s1945_s26 + $0xc8] sm:$0xff] %v254_v25   ;;  %v262_v27 = vld [vmem:[%s1940_s25 + $0x1b0] sm:$0xff]   ;;  %v266_v28 = vld [vmem:[%s1940_s25 + $0x1b8] sm:$0xff]  }
  0x1e   : > { %259 = vst [vmem:[%s1945_s26 + $0xd0] sm:$0xff] %v258_v26   ;;  %v270_v29 = vld [vmem:[%s1940_s25 + $0x1c0] sm:$0xff]   ;;  %263 = vst [vmem:[%s1945_s26 + $0xd8] sm:$0xff] %v262_v27   ;;  %v274_v30 = vld [vmem:[%s1940_s25 + $0x1c8] sm:$0xff]  }
  0x1f   : > { %267 = vst [vmem:[%s1945_s26 + $0xe0] sm:$0xff] %v266_v28   ;;  %271 = vst [vmem:[%s1945_s26 + $0xe8] sm:$0xff] %v270_v29   ;;  %v278_v31 = vld [vmem:[%s1940_s25 + $0x1d0] sm:$0xff]   ;;  %v282_v32 = vld [vmem:[%s1940_s25 + $0x1d8] sm:$0xff]  }
  0x20   : > { %275 = vst [vmem:[%s1945_s26 + $0xf0] sm:$0xff] %v274_v30   ;;  %279 = vst [vmem:[%s1945_s26 + $0xf8] sm:$0xff] %v278_v31   ;;  %v286_v33 = vld [vmem:[%s1940_s25 + $0x1e0] sm:$0xff]   ;;  %v290_v34 = vld [vmem:[%s1940_s25 + $0x1e8] sm:$0xff]  }
  0x21   : > { %283 = vst [vmem:[%s1945_s26 + $0x100] sm:$0xff] %v282_v32   ;;  %v294_v35 = vld [vmem:[%s1940_s25 + $0x1f0] sm:$0xff]   ;;  %287 = vst [vmem:[%s1945_s26 + $0x108] sm:$0xff] %v286_v33  }
  0x22   : > { %291 = vst [vmem:[%s1945_s26 + $0x110] sm:$0xff] %v290_v34   ;;  %295 = vst [vmem:[%s1945_s26 + $0x118] sm:$0xff] %v294_v35  }
  0x23 PF: > { %p1457_p5 = scmp.ge.s32.totalorder %s1884_s14, 1  ;;  %p464_p6 = scmp.lt.s32.totalorder %s1884_s14, 3 }
  0x25   : > { %p465_p7 = pnand %p1457_p5, %p464_p6 }
  0x26   : > { %s471_s29 = sand.u32 (!%p465_p7), 1, %s1876_s12   ;;  %s495_s7 = smul.u32 (!%p465_p7), 18, %s1452_s15 }
  0x27   : > { %468 = sbr.rel (%p465_p7) target bundleno = 327 (0x147), region = 69 }
  0x28   : > { %s1799_s5 = smul.u32 (!%p465_p7), 288, %s471_s29  ;;  %p496_p8 = scmp.lt.s32.totalorder (!%p465_p7), %s495_s7, 35 }
  0x2a   : > { %s2025_s6 = scalar_lea.vmem (!%p465_p7), [#allocation2], %s1799_s5 }
  0x2c   : > { %v1824_v36 = vld [vmem:[%s2239_s1 + $0x8] sm:$0xff]   ;;  %v1825_v37 = vld [vmem:[%s2239_s1] sm:$0xff]   ;;  %vm773_vm0 = vcmask 261120   ;;  %v1827_v39 = vld [vmem:[%s2025_s6 + $0x90] sm:$0xff]   ;;  %s2246_s7 = smov (!%p496_p8, %s495_s7), 35 }
  0x2d   : > { %1718 = vmatprep.subr.bf16.mxu0 %v1824_v36  ;;  %1794 = vmatprep.subr.bf16.mxu1 %v1824_v36  ;;  %v1826_v38 = vld [vmem:[%s2025_s6] sm:$0xff]   ;;  %v1828_v40 = vld [vmem:[%s2025_s6 + $0x8] sm:$0xff]   ;;  %v1829_v41 = vld [vmem:[%s2025_s6 + $0x98] sm:$0xff]   ;;  %s1458_s10 = sshll.u32 %s2246_s7, 2 }
  0x2e   : > { %1719 = vmatpush3.bf16.msra.mxu0 %v1824_v36  ;;  %1796 = vmatpush3.bf16.msra.mxu1 %v1824_v36  ;;  %v1830_v42 = vld [vmem:[%s2025_s6 + $0x10] sm:$0xff]   ;;  %v1831_v43 = vld [vmem:[%s2025_s6 + $0xa0] sm:$0xff]   ;;  %v1832_v44 = vld [vmem:[%s2025_s6 + $0x18] sm:$0xff]   ;;  %s2173_s14 = scalar_lea.vmem %s2241_s3, %s1458_s10 }
  0x2f   : > { %1720 = vmatprep.subr.bf16.mxu0 %v1825_v37  ;;  %1795 = vmatprep.subr.bf16.mxu1 %v1825_v37  ;;  %v1833_v45 = vld [vmem:[%s2025_s6 + $0xa8] sm:$0xff]   ;;  %v1834_v46 = vld [vmem:[%s2025_s6 + $0x20] sm:$0xff]   ;;  %v1835_v47 = vld [vmem:[%s2025_s6 + $0xb0] sm:$0xff]  }
  0x30   : > { %1722 = vmatprep.mubr.msk.bf16.mxu0 %vm773_vm0, %v1826_v38  ;;  %1758 = vmatprep.mubr.msk.bf16.mxu1 %vm773_vm0, %v1827_v39  ;;  %v1836_v48 = vld [vmem:[%s2025_s6 + $0x28] sm:$0xff]   ;;  %v1837_v49 = vld [vmem:[%s2025_s6 + $0xb8] sm:$0xff]   ;;  %v1838_v50 = vld [vmem:[%s2025_s6 + $0x30] sm:$0xff]  }
  0x31   : > { %v1839_v51 = vld [vmem:[%s2025_s6 + $0xc0] sm:$0xff]   ;;  %v1840_v52 = vld [vmem:[%s2025_s6 + $0x38] sm:$0xff]   ;;  %v1841_v53 = vld [vmem:[%s2025_s6 + $0xc8] sm:$0xff]  }
  0x32   : > { %1721 = vmatpush3.bf16.msra.mxu0 %v1825_v37  ;;  %1797 = vmatpush3.bf16.msra.mxu1 %v1825_v37  ;;  %v1842_v54 = vld [vmem:[%s2025_s6 + $0x40] sm:$0xff]   ;;  %v1843_v55 = vld [vmem:[%s2025_s6 + $0xd0] sm:$0xff]   ;;  %v1844_v56 = vld [vmem:[%s2025_s6 + $0x48] sm:$0xff]  }
  0x33   : > { %v1845_v57 = vld [vmem:[%s2025_s6 + $0xd8] sm:$0xff]   ;;  %v1846_v58 = vld [vmem:[%s2025_s6 + $0x50] sm:$0xff]   ;;  %v1847_v59 = vld [vmem:[%s2025_s6 + $0xe0] sm:$0xff]  }
  0x34   : > { %v1848_v60 = vld [vmem:[%s2025_s6 + $0x58] sm:$0xff]   ;;  %v1849_v61 = vld [vmem:[%s2025_s6 + $0xe8] sm:$0xff]   ;;  %v1850_v62 = vld [vmem:[%s2025_s6 + $0x60] sm:$0xff]  }
  0x35   : > { %1723 = vmatmul.mubr.msk.bf16.vlgmr.msra.gmra.mxu0 %vm773_vm0, %v1828_v40  ;;  %1759 = vmatmul.mubr.msk.bf16.vlgmr.msra.gmra.mxu1 %vm773_vm0, %v1829_v41  ;;  %v1851_v63 = vld [vmem:[%s2025_s6 + $0xf0] sm:$0xff]   ;;  %v1852_v0 = vld [vmem:[%s2025_s6 + $0x68] sm:$0xff]   ;;  %v1853_v1 = vld [vmem:[%s2025_s6 + $0xf8] sm:$0xff]  }
  0x36   : > { %1726 = vmatprep.mubr.msk.bf16.mxu0 %vm773_vm0, %v1830_v42  ;;  %1762 = vmatprep.mubr.msk.bf16.mxu1 %vm773_vm0, %v1831_v43  ;;  %v1854_v2 = vld [vmem:[%s2025_s6 + $0x70] sm:$0xff]   ;;  %v1855_v3 = vld [vmem:[%s2025_s6 + $0x100] sm:$0xff]   ;;  %v1856_v4 = vld [vmem:[%s2025_s6 + $0x78] sm:$0xff]  }
  0x37   : > { %v1857_v5 = vld [vmem:[%s2025_s6 + $0x108] sm:$0xff]   ;;  %v1858_v6 = vld [vmem:[%s2025_s6 + $0x80] sm:$0xff]   ;;  %v1859_v7 = vld [vmem:[%s2025_s6 + $0x110] sm:$0xff]  }
  0x38   : > { %v1860_v8 = vld [vmem:[%s2025_s6 + $0x88] sm:$0xff]   ;;  %v1861_v9 = vld [vmem:[%s2025_s6 + $0x118] sm:$0xff]  }
  0x3d   : > { %1727 = vmatmul.mubr.msk.bf16.gmra.mxu0 %vm773_vm0, %v1832_v44  ;;  %1763 = vmatmul.mubr.msk.bf16.gmra.mxu1 %vm773_vm0, %v1833_v45 }
  0x3e   : > { %1730 = vmatprep.mubr.msk.bf16.mxu0 %vm773_vm0, %v1834_v46  ;;  %1766 = vmatprep.mubr.msk.bf16.mxu1 %vm773_vm0, %v1835_v47 }
  0x45   : > { %1731 = vmatmul.mubr.msk.bf16.gmra.mxu0 %vm773_vm0, %v1836_v48  ;;  %1767 = vmatmul.mubr.msk.bf16.gmra.mxu1 %vm773_vm0, %v1837_v49  ;;  %v2160_v49 = vld [vmem:[%s2240_s2] ss:$0 sm:$0xff] }
  0x46   : > { %1734 = vmatprep.mubr.msk.bf16.mxu0 %vm773_vm0, %v1838_v50  ;;  %1770 = vmatprep.mubr.msk.bf16.mxu1 %vm773_vm0, %v1839_v51 }
  0x4d   : > { %1735 = vmatmul.mubr.msk.bf16.gmra.mxu0 %vm773_vm0, %v1840_v52  ;;  %1771 = vmatmul.mubr.msk.bf16.gmra.mxu1 %vm773_vm0, %v1841_v53 }
  0x4e   : > { %1738 = vmatprep.mubr.msk.bf16.mxu0 %vm773_vm0, %v1842_v54  ;;  %1774 = vmatprep.mubr.msk.bf16.mxu1 %vm773_vm0, %v1843_v55 }
  0x55   : > { %1739 = vmatmul.mubr.msk.bf16.gmra.mxu0 %vm773_vm0, %v1844_v56  ;;  %1775 = vmatmul.mubr.msk.bf16.gmra.mxu1 %vm773_vm0, %v1845_v57 }
  0x56   : > { %1742 = vmatprep.mubr.msk.bf16.mxu0 %vm773_vm0, %v1846_v58  ;;  %1778 = vmatprep.mubr.msk.bf16.mxu1 %vm773_vm0, %v1847_v59 }
  0x5d   : > { %1743 = vmatmul.mubr.msk.bf16.gmra.mxu0 %vm773_vm0, %v1848_v60  ;;  %1779 = vmatmul.mubr.msk.bf16.gmra.mxu1 %vm773_vm0, %v1849_v61 }
  0x5e   : > { %1746 = vmatprep.mubr.msk.bf16.mxu0 %vm773_vm0, %v1850_v62  ;;  %1782 = vmatprep.mubr.msk.bf16.mxu1 %vm773_vm0, %v1851_v63 }
  0x65   : > { %1747 = vmatmul.mubr.msk.bf16.gmra.mxu0 %vm773_vm0, %v1852_v0  ;;  %1783 = vmatmul.mubr.msk.bf16.gmra.mxu1 %vm773_vm0, %v1853_v1 }
  0x66   : > { %1750 = vmatprep.mubr.msk.bf16.mxu0 %vm773_vm0, %v1854_v2  ;;  %1786 = vmatprep.mubr.msk.bf16.mxu1 %vm773_vm0, %v1855_v3 }
  0x6d   : > { %1751 = vmatmul.mubr.msk.bf16.gmra.mxu0 %vm773_vm0, %v1856_v4  ;;  %1787 = vmatmul.mubr.msk.bf16.gmra.mxu1 %vm773_vm0, %v1857_v5 }
  0x6e   : > { %1754 = vmatprep.mubr.msk.bf16.mxu0 %vm773_vm0, %v1858_v6  ;;  %1790 = vmatprep.mubr.msk.bf16.mxu1 %vm773_vm0, %v1859_v7 }
  0x75   : > { %1755 = vmatmul.mubr.msk.bf16.gmra.mxu0 %vm773_vm0, %v1860_v8  ;;  %1791 = vmatmul.mubr.msk.bf16.gmra.mxu1 %vm773_vm0, %v1861_v9 }
  0xf5   : > { %v2099_v10 = vpop.f32.mrf.mxu0  ;;  %v2101_v11 = vpop.f32.mrf.mxu1 }
  0xf7   : > { %v916_v12 = vpop.f32.mrf.mxu0  ;;  %v1060_v13 = vpop.f32.mrf.mxu1 }
  0xf9   : > { %v2103_v14 = vpop.f32.mrf.mxu0  ;;  %v2105_v15 = vpop.f32.mrf.mxu1 }
  0xfb   : > { %v919_v16 = vpop.f32.mrf.mxu0  ;;  %v1063_v17 = vpop.f32.mrf.mxu1 }
  0xfd   : > { %v2107_v18 = vpop.f32.mrf.mxu0  ;;  %v2109_v19 = vpop.f32.mrf.mxu1 }
  0xff   : > { %v932_v20 = vpop.f32.mrf.mxu0  ;;  %v1076_v21 = vpop.f32.mrf.mxu1 }
 0x101   : > { %v2111_v22 = vpop.f32.mrf.mxu0  ;;  %v2113_v23 = vpop.f32.mrf.mxu1 }
 0x103   : > { %v2115_v24 = vpop.f32.mrf.mxu0  ;;  %v2117_v25 = vpop.f32.mrf.mxu1 }
 0x105   : > { %v2119_v26 = vpop.f32.mrf.mxu0  ;;  %v2121_v27 = vpop.f32.mrf.mxu1 }
 0x107   : > { %v2123_v28 = vpop.f32.mrf.mxu0  ;;  %v2125_v29 = vpop.f32.mrf.mxu1 }
 0x109   : > { %v2127_v30 = vpop.f32.mrf.mxu0  ;;  %v2129_v31 = vpop.f32.mrf.mxu1 }
 0x10b   : > { %v2131_v32 = vpop.f32.mrf.mxu0  ;;  %v2133_v33 = vpop.f32.mrf.mxu1 }
 0x10d   : > { %v2135_v34 = vpop.f32.mrf.mxu0  ;;  %v2137_v35 = vpop.f32.mrf.mxu1 }
 0x10f   : > { %v2139_v36 = vpop.f32.mrf.mxu0  ;;  %v2141_v37 = vpop.f32.mrf.mxu1 }
 0x111   : > { %v2143_v38 = vpop.f32.mrf.mxu0  ;;  %v2145_v39 = vpop.f32.mrf.mxu1 }
 0x113   : > { %v2149_v40 = vpop.f32.mrf.mxu0  ;;  %v2151_v41 = vpop.f32.mrf.mxu1 }
 0x115   : > { %v1740_v42 = vpop.f32.mrf.mxu0  ;;  %v1776_v43 = vpop.f32.mrf.mxu1 }
 0x116   : > { %v1203_v44 = vmax.f32 %v916_v12, %v1740_v42  ;;  %v1221_v45 = vmax.f32 %v1060_v13, %v1776_v43 }
 0x117   : > { %v2153_v46 = vpop.f32.mrf.mxu0  ;;  %v2155_v47 = vpop.f32.mrf.mxu1 }
 0x118   : > { %v1239_v48 = vmax.f32 %v1203_v44, %v1221_v45 }
 0x119   : > { %v1741_v50 = vpop.f32.mrf.mxu0  ;;  %v1777_v51 = vpop.f32.mrf.mxu1 }
 0x11a   : > { %v1204_v52 = vmax.f32 %v919_v16, %v1741_v50  ;;  %v1222_v53 = vmax.f32 %v1063_v17, %v1777_v51  ;;  %v1264_v56 = vadd.f32 %v2160_v49, %v1239_v48 }
 0x11b   : > { %v2162_v54 = vpop.f32.mrf.mxu0  ;;  %v2164_v55 = vpop.f32.mrf.mxu1 }
 0x11c   : > { %v1240_v57 = vmax.f32 %v1204_v52, %v1222_v53  ;;  %v1282_v1 = vmax.f32 %v1264_v56, 0.0 }
 0x11d   : > { %v1744_v58 = vpop.f32.mrf.mxu0  ;;  %v1780_v59 = vpop.f32.mrf.mxu1 }
 0x11e   : > { %v1265_v60 = vadd.f32 %v2160_v49, %v1240_v57  ;;  %v1207_v61 = vmax.f32 %v932_v20, %v1744_v58  ;;  %v1225_v62 = vmax.f32 %v1076_v21, %v1780_v59 }
 0x11f   : > { %v996_v63 = vpop.f32.mrf.mxu0  ;;  %v1140_v0 = vpop.f32.mrf.mxu1 }
 0x120   : > { %v1283_v2 = vmax.f32 %v1265_v60, 0.0  ;;  %v1205_v3 = vmax.f32 %v2099_v10, %v996_v63  ;;  %v1223_v4 = vmax.f32 %v2101_v11, %v1140_v0  ;;  %v1243_v5 = vmax.f32 %v1207_v61, %v1225_v62 }
 0x121   : > { %v1745_v6 = vpop.f32.mrf.mxu0  ;;  %v1781_v7 = vpop.f32.mrf.mxu1 }
 0x122   : > { %v1630_v8 = vpack.c.bf16 %v1283_v2, %v1282_v1  ;;  %v1241_v9 = vmax.f32 %v1205_v3, %v1223_v4  ;;  %v1208_v12 = vmax.f32 %v2115_v24, %v1745_v6  ;;  %v1226_v13 = vmax.f32 %v2117_v25, %v1781_v7 }
 0x123   : > { %v999_v16 = vpop.f32.mrf.mxu0  ;;  %v1143_v17 = vpop.f32.mrf.mxu1  ;;  %v1268_v20 = vadd.f32 %v2160_v49, %v1243_v5 }
 0x124   : > { %1631 = vst [vmem:[%s2173_s14] sm:$0xff] %v1630_v8   ;;  %v1206_v10 = vmax.f32 %v2103_v14, %v999_v16  ;;  %v1224_v11 = vmax.f32 %v2105_v15, %v1143_v17  ;;  %v1244_v21 = vmax.f32 %v1208_v12, %v1226_v13  ;;  %v1266_v44 = vadd.f32 %v2160_v49, %v1241_v9 }
 0x125   : > { %v1748_v42 = vpop.f32.mrf.mxu0  ;;  %v1784_v43 = vpop.f32.mrf.mxu1  ;;  %v1286_v53 = vmax.f32 %v1268_v20, 0.0 }
 0x126   : > { %v1242_v45 = vmax.f32 %v1206_v10, %v1224_v11  ;;  %v1211_v48 = vmax.f32 %v2123_v28, %v1748_v42  ;;  %v1229_v24 = vmax.f32 %v2125_v29, %v1784_v43  ;;  %v1269_v25 = vadd.f32 %v2160_v49, %v1244_v21 }
 0x127   : > { %v1012_v50 = vpop.f32.mrf.mxu0  ;;  %v1156_v51 = vpop.f32.mrf.mxu1  ;;  %v1284_v60 = vmax.f32 %v1266_v44, 0.0 }
 0x128   : > { %v1267_v14 = vadd.f32 %v2160_v49, %v1242_v45  ;;  %v1209_v15 = vmax.f32 %v2107_v18, %v1012_v50  ;;  %v1227_v52 = vmax.f32 %v2109_v19, %v1156_v51  ;;  %v1287_v56 = vmax.f32 %v1269_v25, 0.0 }
 0x129   : > { %v1247_v57 = vmax.f32 %v1211_v48, %v1229_v24  ;;  %v1749_v58 = vpop.f32.mrf.mxu0  ;;  %v1785_v59 = vpop.f32.mrf.mxu1 }
 0x12a   : > { %v1285_v28 = vmax.f32 %v1267_v14, 0.0  ;;  %v1212_v29 = vmax.f32 %v2131_v32, %v1749_v58  ;;  %v1640_v61 = vpack.c.bf16 %v1287_v56, %v1286_v53  ;;  %v1245_v62 = vmax.f32 %v1209_v15, %v1227_v52 }
 0x12b   : > { %v1230_v63 = vmax.f32 %v2133_v33, %v1785_v59  ;;  %v1015_v0 = vpop.f32.mrf.mxu0  ;;  %v1159_v1 = vpop.f32.mrf.mxu1  ;;  %v1272_v2 = vadd.f32 %v2160_v49, %v1247_v57 }
 0x12c   : > { %v1635_v18 = vpack.c.bf16 %v1285_v28, %v1284_v60  ;;  %v1210_v19 = vmax.f32 %v2111_v22, %v1015_v0  ;;  %1673 = vst [vmem:[%s2173_s14 + $0x10] sm:$0xff] %v1640_v61   ;;  %v1228_v4 = vmax.f32 %v2113_v23, %v1159_v1  ;;  %v1270_v33 = vadd.f32 %v2160_v49, %v1245_v62 }
 0x12d   : > { %v1248_v3 = vmax.f32 %v1212_v29, %v1230_v63  ;;  %v1752_v5 = vpop.f32.mrf.mxu0  ;;  %v1788_v6 = vpop.f32.mrf.mxu1  ;;  %v1290_v23 = vmax.f32 %v1272_v2, 0.0 }
 0x12e   : > { %1672 = vst [vmem:[%s2173_s14 + $0x8] sm:$0xff] %v1635_v18   ;;  %v1215_v32 = vmax.f32 %v2139_v36, %v1752_v5  ;;  %v1233_v7 = vmax.f32 %v2141_v37, %v1788_v6  ;;  %v1246_v9 = vmax.f32 %v1210_v19, %v1228_v4  ;;  %v1288_v42 = vmax.f32 %v1270_v33, 0.0 }
 0x12f   : > { %v1273_v8 = vadd.f32 %v2160_v49, %v1248_v3  ;;  %v1028_v12 = vpop.f32.mrf.mxu0  ;;  %v1172_v22 = vpop.f32.mrf.mxu1 }
 0x130   : > { %v1251_v13 = vmax.f32 %v1215_v32, %v1233_v7  ;;  %v1213_v16 = vmax.f32 %v2119_v26, %v1028_v12  ;;  %v1231_v17 = vmax.f32 %v2121_v27, %v1172_v22  ;;  %v1271_v11 = vadd.f32 %v2160_v49, %v1246_v9 }
 0x131   : > { %v1291_v10 = vmax.f32 %v1273_v8, 0.0  ;;  %v1753_v36 = vpop.f32.mrf.mxu0  ;;  %v1789_v20 = vpop.f32.mrf.mxu1 }
 0x132   : > { %v1216_v37 = vmax.f32 %v2149_v40, %v1753_v36  ;;  %v1234_v21 = vmax.f32 %v2151_v41, %v1789_v20  ;;  %v1289_v44 = vmax.f32 %v1271_v11, 0.0  ;;  %v1249_v45 = vmax.f32 %v1213_v16, %v1231_v17 }
 0x133   : > { %v1650_v43 = vpack.c.bf16 %v1291_v10, %v1290_v23  ;;  %v1031_v48 = vpop.f32.mrf.mxu0  ;;  %v1175_v26 = vpop.f32.mrf.mxu1  ;;  %v1276_v27 = vadd.f32 %v2160_v49, %v1251_v13 }
 0x134   : > { %v1252_v24 = vmax.f32 %v1216_v37, %v1234_v21  ;;  %v1214_v25 = vmax.f32 %v2127_v30, %v1031_v48  ;;  %v1645_v50 = vpack.c.bf16 %v1289_v44, %v1288_v42  ;;  %v1232_v51 = vmax.f32 %v2129_v31, %v1175_v26 }
 0x135   : > { %1675 = vst [vmem:[%s2173_s14 + $0x20] sm:$0xff] %v1650_v43   ;;  %v1756_v14 = vpop.f32.mrf.mxu0  ;;  %v1792_v40 = vpop.f32.mrf.mxu1  ;;  %v1274_v53 = vadd.f32 %v2160_v49, %v1249_v45  ;;  %v1294_v59 = vmax.f32 %v1276_v27, 0.0 }
 0x136   : > { %v1277_v41 = vadd.f32 %v2160_v49, %v1252_v24  ;;  %v1219_v15 = vmax.f32 %v2153_v46, %v1756_v14  ;;  %v1237_v52 = vmax.f32 %v2155_v47, %v1792_v40  ;;  %1674 = vst [vmem:[%s2173_s14 + $0x18] sm:$0xff] %v1645_v50   ;;  %v1250_v56 = vmax.f32 %v1214_v25, %v1232_v51 }
 0x137   : > { %v1044_v57 = vpop.f32.mrf.mxu0  ;;  %v1188_v58 = vpop.f32.mrf.mxu1  ;;  %v1292_v0 = vmax.f32 %v1274_v53, 0.0 }
 0x138   : > { %v1295_v30 = vmax.f32 %v1277_v41, 0.0  ;;  %v1217_v60 = vmax.f32 %v2135_v34, %v1044_v57  ;;  %v1235_v31 = vmax.f32 %v2137_v35, %v1188_v58  ;;  %v1275_v28 = vadd.f32 %v2160_v49, %v1250_v56 }
 0x139   : > { %v1255_v29 = vmax.f32 %v1219_v15, %v1237_v52  ;;  %v1757_v61 = vpop.f32.mrf.mxu0  ;;  %v1793_v46 = vpop.f32.mrf.mxu1 }
 0x13a   : > { %v1660_v62 = vpack.c.bf16 %v1295_v30, %v1294_v59  ;;  %v1253_v47 = vmax.f32 %v1217_v60, %v1235_v31  ;;  %v1220_v63 = vmax.f32 %v2162_v54, %v1757_v61  ;;  %v1293_v1 = vmax.f32 %v1275_v28, 0.0 }
 0x13b   : > { %v1238_v18 = vmax.f32 %v2164_v55, %v1793_v46  ;;  %v1047_v19 = vpop.f32.mrf.mxu0  ;;  %v1191_v2 = vpop.f32.mrf.mxu1  ;;  %v1280_v4 = vadd.f32 %v2160_v49, %v1255_v29 }
 0x13c   : > { %1677 = vst [vmem:[%s2173_s14 + $0x30] sm:$0xff] %v1660_v62   ;;  %v1218_v34 = vmax.f32 %v2143_v38, %v1047_v19  ;;  %v1236_v35 = vmax.f32 %v2145_v39, %v1191_v2  ;;  %v1655_v3 = vpack.c.bf16 %v1293_v1, %v1292_v0  ;;  %v1278_v6 = vadd.f32 %v2160_v49, %v1253_v47 }
 0x13d   : > { %v1256_v5 = vmax.f32 %v1220_v63, %v1238_v18  ;;  %v1298_v7 = vmax.f32 %v1280_v4, 0.0 }
 0x13e   : > { %v1254_v54 = vmax.f32 %v1218_v34, %v1236_v35  ;;  %1676 = vst [vmem:[%s2173_s14 + $0x28] sm:$0xff] %v1655_v3   ;;  %v1296_v8 = vmax.f32 %v1278_v6, 0.0 }
 0x13f   : > { %v1281_v32 = vadd.f32 %v2160_v49, %v1256_v5 }
 0x140   : > { %v1279_v55 = vadd.f32 %v2160_v49, %v1254_v54 }
 0x141   : > { %v1299_v33 = vmax.f32 %v1281_v32, 0.0 }
 0x142   : > { %v1297_v38 = vmax.f32 %v1279_v55, 0.0 }
 0x143   : > { %v1670_v9 = vpack.c.bf16 %v1299_v33, %v1298_v7 }
 0x144   : > { %v1665_v12 = vpack.c.bf16 %v1297_v38, %v1296_v8 }
 0x145   : > { %1679 = vst [vmem:[%s2173_s14 + $0x40] sm:$0xff] %v1670_v9  }
 0x146   : > { %1678 = vst [vmem:[%s2173_s14 + $0x38] sm:$0xff] %v1665_v12  }
 0x147 PF: > { %p10_p9 = scmp.ge.s32.totalorder %s1923_s16, 4   ;;  %s2242_s12 = smov %s1880_s13 }
 0x148   : > { %s2243_s13 = smov %s1932_s19  ;;  %s2244_s14 = smov %s1923_s16 }
 0x149   :  { %12 = sbr.rel (!%p10_p9) target bundleno = 2 (0x2), region = 111 }

// kernel: net_forward.4
= control target key start
LH: loop header
LB: loop body
LE: loop exit
PB: predicated region body
PF: predicated region fallthrough
CT: control target
= control target key end

     0   :  { %s780_s12 = smov 0   ;;  %s782_s13 = smov 0   ;;  %s893_s0 = inlined_call_operand.vmem [shape: bf16[4,32,256], index: 0, kind: input, shape index: {}]   ;;  %s894_s1 = inlined_call_operand.vmem [shape: bf16[256,128], index: 1, kind: input, shape index: {}]   ;;  %s895_s2 = inlined_call_operand.vmem [shape: f32[1,128], index: 2, kind: input, shape index: {}]   ;;  %s896_s3 = inlined_call_operand.vmem [shape: bf16[32,128], index: 3, kind: output, shape index: {}]  }
   0x1   :  { %s784_s14 = smov 0  }
   0x2 LB: > { %s572_s15 = sadd.s32 4294967295, %s758_s14   ;;  %s797_s16 = sadd.s32 1, %s758_s14   ;;  %s758_s14 = sphi %s784_s14, %s899_s14   ;;  %s754_s13 = sphi %s782_s13, %s898_s13   ;;  %s750_s12 = sphi %s780_s12, %s897_s12  }
   0x3   : > { %s17_s17 = ssub.s32 %s758_s14, %s797_s16  ;;  %s20_s18 = sadd.s32 1, %s754_s13 }
   0x4   : > { %p18_p0 = scmp.eq.s32.totalorder %s17_s17, 0  ;;  %p27_p1 = scmp.ne.s32.totalorder %s754_s13, %s750_s12 }
   0x5   : > { %p28_p2 = scmp.eq.s32.totalorder %s758_s14, 0  ;;  %p575_p4 = scmp.ge.s32.totalorder %s758_s14, 2 }
   0x6   : > { %s806_s19 = scalar_select %p18_p0, %s754_s13, %s20_s18  }
   0x7   : > { %p29_p3 = por %p28_p2, %p27_p1  ;;  %127 = sbr.rel (%p575_p4) target bundleno = 20 (0x14), region = 24 }
   0xc   : > { %130 = sbr.rel (!%p29_p3) target bundleno = 20 (0x14), region = 28  ;;  %s132_s20 = sand.u32 (%p29_p3), 1, %s754_s13  }
   0xd   : > { %s620_s21 = sshll.u32 (%p29_p3), %s758_s14, 4  ;;  %s576_s22 = sshll.u32 (%p29_p3), %s132_s20, 6 }
   0xe   : > { %s138_s25 = scalar_lea.vmem (%p29_p3), %s893_s0, %s620_s21  ;;  %s134_s26 = scalar_lea.vmem (%p29_p3), [#allocation2], %s576_s22 }
   0xf   : > { %v181_v0 = vld [vmem:[%s138_s25] sm:$0xff] (%p29_p3)  ;;  %v183_v1 = vld [vmem:[%s138_s25 + $0x8] sm:$0xff] (%p29_p3) }
  0x10   : > { %v185_v2 = vld [vmem:[%s138_s25 + $0x20] sm:$0xff] (%p29_p3)  ;;  %182 = vst [vmem:[%s134_s26] sm:$0xff] (%p29_p3), %v181_v0  ;;  %184 = vst [vmem:[%s134_s26 + $0x8] sm:$0xff] (%p29_p3), %v183_v1  ;;  %v187_v3 = vld [vmem:[%s138_s25 + $0x28] sm:$0xff] (%p29_p3) }
  0x11   : > { %186 = vst [vmem:[%s134_s26 + $0x10] sm:$0xff] %v185_v2  ;;  %v189_v4 = vld [vmem:[%s138_s25 + $0x40] sm:$0xff]  ;;  %v191_v5 = vld [vmem:[%s138_s25 + $0x48] sm:$0xff]  ;;  %188 = vst [vmem:[%s134_s26 + $0x18] sm:$0xff] %v187_v3 }
  0x12   : > { %190 = vst [vmem:[%s134_s26 + $0x20] sm:$0xff] %v189_v4  ;;  %192 = vst [vmem:[%s134_s26 + $0x28] sm:$0xff] %v191_v5  ;;  %v193_v6 = vld [vmem:[%s138_s25 + $0x60] sm:$0xff]  ;;  %v195_v7 = vld [vmem:[%s138_s25 + $0x68] sm:$0xff] }
  0x13   : > { %194 = vst [vmem:[%s134_s26 + $0x30] sm:$0xff] %v193_v6  ;;  %196 = vst [vmem:[%s134_s26 + $0x38] sm:$0xff] %v195_v7 }
  0x14 PF: > { %p580_p5 = scmp.ge.s32.totalorder %s758_s14, 1  ;;  %p201_p6 = scmp.lt.s32.totalorder %s758_s14, 3 }
  0x16   : > { %p202_p7 = pnand %p580_p5, %p201_p6 }
  0x17   : > { %s208_s20 = sand.u32 (!%p202_p7), 1, %s750_s12   ;;  %s582_s18 = sshll.u32 (!%p202_p7), %s572_s15, 1 }
  0x18   : > { %205 = sbr.rel (%p202_p7) target bundleno = 282 (0x11a), region = 66  ;;  %s581_s23 = sshll.u32 (!%p202_p7), %s208_s20, 6 }
  0x19   : > { %s850_s29 = scalar_lea.vmem (!%p202_p7), [#allocation2], %s581_s23  ;;  %p233_p8 = scmp.lt.s32.totalorder (!%p202_p7), %s582_s18, 3 }
  0x1d   : > { %v708_v8 = vld [vmem:[%s894_s1 + $0x78] sm:$0xff]   ;;  %v710_v10 = vld [vmem:[%s894_s1 + $0x70] sm:$0xff]   ;;  %v712_v12 = vld [vmem:[%s894_s1 + $0x68] sm:$0xff]   ;;  %s901_s18 = smov (!%p233_p8, %s582_s18), 3 }
  0x1e   : > { %v709_v9 = vld [vmem:[%s894_s1 + $0x38] sm:$0xff]   ;;  %628 = vmatprep.subr.bf16.mxu0 %v708_v8  ;;  %668 = vmatprep.subr.bf16.mxu1 %v708_v8  ;;  %v711_v11 = vld [vmem:[%s894_s1 + $0x30] sm:$0xff]   ;;  %v713_v13 = vld [vmem:[%s894_s1 + $0x28] sm:$0xff]   ;;  %s583_s14 = sshll.u32 %s901_s18, 2 }
  0x1f   : > { %629 = vmatpush3.bf16.msra.mxu0 %v709_v9  ;;  %676 = vmatpush3.bf16.msra.mxu1 %v709_v9  ;;  %v714_v14 = vld [vmem:[%s894_s1 + $0x60] sm:$0xff]   ;;  %v716_v16 = vld [vmem:[%s894_s1 + $0x58] sm:$0xff]   ;;  %v718_v18 = vld [vmem:[%s894_s1 + $0x50] sm:$0xff]   ;;  %s236_s23 = scalar_lea.vmem %s896_s3, %s583_s14 }
  0x20   : > { %630 = vmatprep.subr.bf16.mxu0 %v710_v10  ;;  %669 = vmatprep.subr.bf16.mxu1 %v710_v10  ;;  %v715_v15 = vld [vmem:[%s894_s1 + $0x20] sm:$0xff]   ;;  %v717_v17 = vld [vmem:[%s894_s1 + $0x18] sm:$0xff]   ;;  %v719_v21 = vld [vmem:[%s894_s1 + $0x10] sm:$0xff]  }
  0x21   : > { %v726_v19 = vld [vmem:[%s850_s29 + $0x4] ss:$8 sps:$4 sm:$0xff]   ;;  %v724_v26 = vld [vmem:[%s850_s29] ss:$8 sps:$4 sm:$0xff]   ;;  %v730_v28 = vld [vmem:[%s850_s29 + $0x14] ss:$8 sps:$4 sm:$0xff]  }
  0x22   : > { %v729_v20 = vld [vmem:[%s850_s29 + $0x24] ss:$8 sps:$4 sm:$0xff]   ;;  %450 = vmatprep.mubr.bf16.mxu0 %v726_v19  ;;  %v727_v27 = vld [vmem:[%s850_s29 + $0x20] ss:$8 sps:$4 sm:$0xff]   ;;  %v732_v29 = vld [vmem:[%s850_s29 + $0x34] ss:$8 sps:$4 sm:$0xff]  }
  0x23   : > { %631 = vmatpush3.bf16.msra.mxu0 %v711_v11  ;;  %677 = vmatpush3.bf16.msra.mxu1 %v711_v11  ;;  %v720_v22 = vld [vmem:[%s894_s1 + $0x48] sm:$0xff]   ;;  %v722_v24 = vld [vmem:[%s894_s1 + $0x40] sm:$0xff]   ;;  %v734_v30 = vld [vmem:[%s850_s29 + $0x10] ss:$8 sps:$4 sm:$0xff]  }
  0x24   : > { %632 = vmatprep.subr.bf16.mxu0 %v712_v12  ;;  %670 = vmatprep.subr.bf16.mxu1 %v712_v12  ;;  %v721_v23 = vld [vmem:[%s894_s1 + $0x8] sm:$0xff]   ;;  %v723_v25 = vld [vmem:[%s894_s1] sm:$0xff]   ;;  %v735_v31 = vld [vmem:[%s850_s29 + $0x30] ss:$8 sps:$4 sm:$0xff]  }
  0x25   : > { %466 = vmatprep.mubr.bf16.mxu1 %v729_v20  ;;  %v614_v59 = vld [vmem:[%s895_s2] ss:$0 sm:$0xff] }
  0x27   : > { %633 = vmatpush3.bf16.msra.mxu0 %v713_v13  ;;  %678 = vmatpush3.bf16.msra.mxu1 %v713_v13 }
  0x28   : > { %634 = vmatprep.subr.bf16.mxu0 %v714_v14  ;;  %671 = vmatprep.subr.bf16.mxu1 %v714_v14 }
  0x2b   : > { %635 = vmatpush3.bf16.msra.mxu0 %v715_v15  ;;  %679 = vmatpush3.bf16.msra.mxu1 %v715_v15 }
  0x2c   : > { %636 = vmatprep.subr.bf16.mxu0 %v716_v16  ;;  %672 = vmatprep.subr.bf16.mxu1 %v716_v16 }
  0x2f   : > { %637 = vmatpush3.bf16.msra.mxu0 %v717_v17  ;;  %680 = vmatpush3.bf16.msra.mxu1 %v717_v17 }
  0x30   : > { %638 = vmatprep.subr.bf16.mxu0 %v718_v18  ;;  %673 = vmatprep.subr.bf16.mxu1 %v718_v18 }
  0x33   : > { %639 = vmatpush3.bf16.msra.mxu0 %v719_v21  ;;  %681 = vmatpush3.bf16.msra.mxu1 %v719_v21 }
  0x34   : > { %640 = vmatprep.subr.bf16.mxu0 %v720_v22  ;;  %674 = vmatprep.subr.bf16.mxu1 %v720_v22 }
  0x37   : > { %641 = vmatpush3.bf16.msra.mxu0 %v721_v23  ;;  %682 = vmatpush3.bf16.msra.mxu1 %v721_v23 }
  0x38   : > { %642 = vmatprep.subr.bf16.mxu0 %v722_v24  ;;  %675 = vmatprep.subr.bf16.mxu1 %v722_v24 }
  0x3b   : > { %643 = vmatpush3.bf16.msra.mxu0 %v723_v25  ;;  %683 = vmatpush3.bf16.msra.mxu1 %v723_v25 }
  0x3e   : > { %451 = vmatmul.mubr.bf16.vlgmr.msra.gmra.mxu0 %v724_v26  ;;  %467 = vmatmul.mubr.bf16.vlgmr.msra.gmra.mxu1 %v727_v27 }
  0x3f   : > { %458 = vmatprep.mubr.bf16.mxu0 %v730_v28  ;;  %474 = vmatprep.mubr.bf16.mxu1 %v732_v29 }
  0x46   : > { %459 = vmatmul.mubr.bf16.gmra.mxu0 %v734_v30  ;;  %475 = vmatmul.mubr.bf16.gmra.mxu1 %v735_v31 }
  0xfe   : > { %v644_v32 = vpop.f32.mrf.mxu0  ;;  %v656_v33 = vpop.f32.mrf.mxu1 }
 0x100   : > { %v645_v34 = vpop.f32.mrf.mxu0  ;;  %v657_v35 = vpop.f32.mrf.mxu1 }
 0x101   : > { %v646_v44 = vadd.f32 %v645_v34, %v644_v32  ;;  %v658_v45 = vadd.f32 %v657_v35, %v656_v33 }
 0x102   : > { %v647_v36 = vpop.f32.mrf.mxu0  ;;  %v659_v37 = vpop.f32.mrf.mxu1 }
 0x104   : > { %v648_v38 = vpop.f32.mrf.mxu0  ;;  %v660_v39 = vpop.f32.mrf.mxu1 }
 0x105   : > { %v649_v52 = vadd.f32 %v648_v38, %v647_v36  ;;  %v661_v55 = vadd.f32 %v660_v39, %v659_v37 }
 0x106   : > { %v650_v40 = vpop.f32.mrf.mxu0  ;;  %v662_v41 = vpop.f32.mrf.mxu1 }
 0x108   : > { %v651_v42 = vpop.f32.mrf.mxu0  ;;  %v663_v43 = vpop.f32.mrf.mxu1 }
 0x109   : > { %v652_v46 = vadd.f32 %v651_v42, %v650_v40  ;;  %v664_v47 = vadd.f32 %v663_v43, %v662_v41 }
 0x10a   : > { %v653_v48 = vpop.f32.mrf.mxu0  ;;  %v665_v49 = vpop.f32.mrf.mxu1 }
 0x10b   : > { %v483_v50 = vmax.f32 %v646_v44, %v652_v46  ;;  %v485_v51 = vmax.f32 %v658_v45, %v664_v47 }
 0x10c   : > { %v654_v53 = vpop.f32.mrf.mxu0  ;;  %v666_v54 = vpop.f32.mrf.mxu1 }
 0x10d   : > { %v487_v56 = vmax.f32 %v483_v50, %v485_v51  ;;  %v655_v57 = vadd.f32 %v654_v53, %v653_v48  ;;  %v667_v58 = vadd.f32 %v666_v54, %v665_v49 }
 0x10f   : > { %v484_v60 = vmax.f32 %v649_v52, %v655_v57  ;;  %v486_v61 = vmax.f32 %v661_v55, %v667_v58  ;;  %v496_v62 = vadd.f32 %v614_v59, %v487_v56 }
 0x111   : > { %v488_v63 = vmax.f32 %v484_v60, %v486_v61  ;;  %v498_v1 = vmax.f32 %v496_v62, 0.0 }
 0x113   : > { %v497_v0 = vadd.f32 %v614_v59, %v488_v63 }
 0x115   : > { %v499_v2 = vmax.f32 %v497_v0, 0.0 }
 0x117   : > { %v626_v3 = vpack.c.bf16 %v499_v2, %v498_v1 }
 0x119   : > { %627 = vst [vmem:[%s236_s23] sm:$0xff] %v626_v3  }
 0x11a PF: > { %p10_p9 = scmp.ge.s32.totalorder %s797_s16, 4   ;;  %s897_s12 = smov %s754_s13 }
 0x11b   : > { %s898_s13 = smov %s806_s19  ;;  %s899_s14 = smov %s797_s16 }
 0x11c   :  { %12 = sbr.rel (!%p10_p9) target bundleno = 2 (0x2), region = 108 }

// kernel: net_forward.5
= control target key start
LH: loop header
LB: loop body
LE: loop exit
PB: predicated region body
PF: predicated region fallthrough
CT: control target
= control target key end

     0   :  { %v305_v28 = vlaneseq  ;;  %v2456_v36 = vmov 1966171168   ;;  %s3041_s0 = inlined_call_operand.vmem [shape: bf16[2,2048], index: 0, kind: input, shape index: {}]   ;;  %s3042_s1 = inlined_call_operand.vmem [shape: bf16[2048,128], index: 1, kind: input, shape index: {}]   ;;  %s3043_s2 = inlined_call_operand.vmem [shape: f32[1,128], index: 2, kind: input, shape index: {}]   ;;  %s3044_s3 = inlined_call_operand.vmem [shape: bf16[128,128], index: 3, kind: input, shape index: {}]   ;;  %s3045_s4 = inlined_call_operand.vmem [shape: f32[1,128], index: 4, kind: input, shape index: {}]   ;;  %s3046_s5 = inlined_call_operand.vmem [shape: bf16[128,128], index: 5, kind: input, shape index: {}]   ;;  %s3047_s6 = inlined_call_operand.vmem [shape: f32[1,128], index: 6, kind: input, shape index: {}]   ;;  %s3048_s7 = inlined_call_operand.vmem [shape: bf16[128,128], index: 7, kind: input, shape index: {}]   ;;  %s3049_s8 = inlined_call_operand.vmem [shape: f32[1,128], index: 8, kind: input, shape index: {}]   ;;  %s3050_s9 = inlined_call_operand.hbm [shape: f32[2,128], index: 9, kind: output, shape index: {}]  }
   0x1   :  { %v2280_v0 = vld [vmem:[%s3042_s1 + $0x78] sm:$0xff]   ;;  %v2284_v4 = vld [vmem:[%s3042_s1 + $0x70] sm:$0xff]   ;;  %v2288_v8 = vld [vmem:[%s3042_s1 + $0x68] sm:$0xff]   ;;  %v303_v37 = vunpack.c.l.s4 %v2456_v36 }
   0x2   :  { %v2281_v1 = vld [vmem:[%s3042_s1 + $0xf8] sm:$0xff]   ;;  %2013 = vmatprep.subr.bf16.mxu0 %v2280_v0  ;;  %v2285_v5 = vld [vmem:[%s3042_s1 + $0xf0] sm:$0xff]   ;;  %v2289_v9 = vld [vmem:[%s3042_s1 + $0xe8] sm:$0xff]   ;;  %v306_v33 = vshrl.u32 %v305_v28, 7 }
   0x3   :  { %v2282_v2 = vld [vmem:[%s3042_s1 + $0x38] sm:$0xff]   ;;  %2035 = vmatprep.subr.bf16.mxu1 %v2281_v1  ;;  %v2286_v6 = vld [vmem:[%s3042_s1 + $0x30] sm:$0xff]   ;;  %v2290_v10 = vld [vmem:[%s3042_s1 + $0x28] sm:$0xff]   ;;  %v304_v40 = vunpack.c.0.s8 %v303_v37 }
   0x4   :  { %v2283_v3 = vld [vmem:[%s3042_s1 + $0xb8] sm:$0xff]   ;;  %2014 = vmatpush3.bf16.msra.mxu0 %v2282_v2  ;;  %v2287_v7 = vld [vmem:[%s3042_s1 + $0xb0] sm:$0xff]   ;;  %v2291_v11 = vld [vmem:[%s3042_s1 + $0xa8] sm:$0xff]  }
   0x5   :  { %2036 = vmatpush3.bf16.msra.mxu1 %v2283_v3  ;;  %2015 = vmatprep.subr.bf16.mxu0 %v2284_v4  ;;  %v2292_v12 = vld [vmem:[%s3042_s1 + $0x60] sm:$0xff]   ;;  %v2296_v16 = vld [vmem:[%s3042_s1 + $0x58] sm:$0xff]   ;;  %v2300_v20 = vld [vmem:[%s3042_s1 + $0x50] sm:$0xff]   ;;  %v2615_v41 = vsub.s32 %v304_v40, %v306_v33 }
   0x6   :  { %2037 = vmatprep.subr.bf16.mxu1 %v2285_v5  ;;  %v2293_v13 = vld [vmem:[%s3042_s1 + $0xe0] sm:$0xff]   ;;  %v2297_v17 = vld [vmem:[%s3042_s1 + $0xd8] sm:$0xff]   ;;  %v2301_v21 = vld [vmem:[%s3042_s1 + $0xd0] sm:$0xff]  }
   0x7   :  { %v2294_v14 = vld [vmem:[%s3042_s1 + $0x20] sm:$0xff]   ;;  %v2298_v18 = vld [vmem:[%s3042_s1 + $0x18] sm:$0xff]   ;;  %v2302_v22 = vld [vmem:[%s3042_s1 + $0x10] sm:$0xff]  }
   0x8   :  { %2016 = vmatpush3.bf16.msra.mxu0 %v2286_v6  ;;  %v2295_v15 = vld [vmem:[%s3042_s1 + $0xa0] sm:$0xff]   ;;  %v2299_v19 = vld [vmem:[%s3042_s1 + $0x98] sm:$0xff]   ;;  %v2303_v23 = vld [vmem:[%s3042_s1 + $0x90] sm:$0xff]  }
   0x9   :  { %2038 = vmatpush3.bf16.msra.mxu1 %v2287_v7  ;;  %2017 = vmatprep.subr.bf16.mxu0 %v2288_v8  ;;  %v2304_v24 = vld [vmem:[%s3042_s1 + $0x48] sm:$0xff]   ;;  %v2308_v29 = vld [vmem:[%s3042_s1 + $0x40] sm:$0xff]   ;;  %v2313_v35 = vld [vmem:[%s3042_s1 + $0x178] sm:$0xff]  }
   0xa   :  { %2039 = vmatprep.subr.bf16.mxu1 %v2289_v9  ;;  %v2305_v25 = vld [vmem:[%s3042_s1 + $0xc8] sm:$0xff]   ;;  %v2309_v30 = vld [vmem:[%s3042_s1 + $0xc0] sm:$0xff]   ;;  %v2314_v38 = vld [vmem:[%s3042_s1 + $0x1f8] sm:$0xff]  }
   0xb   :  { %v2306_v26 = vld [vmem:[%s3042_s1 + $0x8] sm:$0xff]   ;;  %v2310_v31 = vld [vmem:[%s3042_s1] sm:$0xff]   ;;  %v2315_v47 = vld [vmem:[%s3042_s1 + $0x138] sm:$0xff]  }
   0xc   :  { %2018 = vmatpush3.bf16.msra.mxu0 %v2290_v10  ;;  %v2307_v27 = vld [vmem:[%s3042_s1 + $0x88] sm:$0xff]   ;;  %v2311_v32 = vld [vmem:[%s3042_s1 + $0x80] sm:$0xff]   ;;  %v2316_v49 = vld [vmem:[%s3042_s1 + $0x1b8] sm:$0xff]  }
   0xd   :  { %2040 = vmatpush3.bf16.msra.mxu1 %v2291_v11  ;;  %2019 = vmatprep.subr.bf16.mxu0 %v2292_v12  ;;  %v34_v34 = vld [vmem:[%s3041_s0] sm:$0xff]  ;;  %v2317_v52 = vld [vmem:[%s3042_s1 + $0x170] sm:$0xff]   ;;  %v2321_v58 = vld [vmem:[%s3042_s1 + $0x168] sm:$0xff]  }
   0xe   :  { %2041 = vmatprep.subr.bf16.mxu1 %v2293_v13  ;;  %v301_v39 = vcombine.high %v34_v34, %v34_v34  ;;  %v308_v42 = vrot.slane %v34_v34, %v2615_v41  ;;  %v2318_v54 = vld [vmem:[%s3042_s1 + $0x1f0] sm:$0xff]   ;;  %v2322_v59 = vld [vmem:[%s3042_s1 + $0x1e8] sm:$0xff]   ;;  %v2325_v62 = vld [vmem:[%s3042_s1 + $0x160] sm:$0xff]  }
   0xf   :  { %v2319_v55 = vld [vmem:[%s3042_s1 + $0x130] sm:$0xff]   ;;  %v2323_v60 = vld [vmem:[%s3042_s1 + $0x128] sm:$0xff]   ;;  %v2326_v63 = vld [vmem:[%s3042_s1 + $0x1e0] sm:$0xff]  }
  0x10   :  { %2020 = vmatpush3.bf16.msra.mxu0 %v2294_v14  ;;  %v2619_v43 = vrot.slane %v301_v39, %v2615_v41  ;;  %v316_v44 = vcombine.high %v308_v42, %v308_v42  ;;  %v324_v45 = vrot.slane %v308_v42, %v2615_v41  ;;  %v2320_v57 = vld [vmem:[%s3042_s1 + $0x1b0] sm:$0xff]   ;;  %v2324_v61 = vld [vmem:[%s3042_s1 + $0x1a8] sm:$0xff]   ;;  %v2327_v0 = vld [vmem:[%s3042_s1 + $0x120] sm:$0xff]  }
  0x11   :  { %2042 = vmatpush3.bf16.msra.mxu1 %v2295_v15  ;;  %2021 = vmatprep.subr.bf16.mxu0 %v2296_v16  ;;  %v2328_v1 = vld [vmem:[%s3042_s1 + $0x1a0] sm:$0xff]   ;;  %v2329_v2 = vld [vmem:[%s3042_s1 + $0x158] sm:$0xff]   ;;  %v2333_v6 = vld [vmem:[%s3042_s1 + $0x150] sm:$0xff]  }
  0x12   :  { %2043 = vmatprep.subr.bf16.mxu1 %v2297_v17  ;;  %v317_v46 = vcombine.high %v2619_v43, %v2619_v43  ;;  %v338_v48 = vrot.slane %v316_v44, %v2615_v41  ;;  %v346_v51 = vcombine.high %v324_v45, %v324_v45  ;;  %v2330_v3 = vld [vmem:[%s3042_s1 + $0x1d8] sm:$0xff]   ;;  %v2334_v7 = vld [vmem:[%s3042_s1 + $0x1d0] sm:$0xff]   ;;  %v2337_v10 = vld [vmem:[%s3042_s1 + $0x148] sm:$0xff]  }
  0x13   :  { %v2331_v4 = vld [vmem:[%s3042_s1 + $0x118] sm:$0xff]   ;;  %v2335_v8 = vld [vmem:[%s3042_s1 + $0x110] sm:$0xff]   ;;  %v2338_v11 = vld [vmem:[%s3042_s1 + $0x1c8] sm:$0xff]  }
  0x14   :  { %2022 = vmatpush3.bf16.msra.mxu0 %v2298_v18  ;;  %v345_v50 = vrot.slane %v317_v46, %v2615_v41  ;;  %1215 = vmatprep.mubr.bf16.mxu0 %v338_v48  ;;  %v348_v53 = vcombine.high %v338_v48, %v338_v48  ;;  %v2332_v5 = vld [vmem:[%s3042_s1 + $0x198] sm:$0xff]   ;;  %v2336_v9 = vld [vmem:[%s3042_s1 + $0x190] sm:$0xff]   ;;  %v2339_v12 = vld [vmem:[%s3042_s1 + $0x108] sm:$0xff]   ;;  %v331_v18 = vrot.slane %v2619_v43, %v2615_v41 }
  0x15   :  { %2044 = vmatpush3.bf16.msra.mxu1 %v2299_v19  ;;  %2023 = vmatprep.subr.bf16.mxu0 %v2300_v20  ;;  %v2340_v13 = vld [vmem:[%s3042_s1 + $0x188] sm:$0xff]   ;;  %v2341_v14 = vld [vmem:[%s3042_s1 + $0x140] sm:$0xff]   ;;  %v2345_v19 = vld [vmem:[%s3042_s1 + $0x278] sm:$0xff]  }
  0x16   :  { %2045 = vmatprep.subr.bf16.mxu1 %v2301_v21  ;;  %v349_v56 = vcombine.high %v345_v50, %v345_v50  ;;  %1255 = vmatprep.mubr.bf16.mxu1 %v348_v53  ;;  %v2342_v15 = vld [vmem:[%s3042_s1 + $0x1c0] sm:$0xff]   ;;  %v2346_v20 = vld [vmem:[%s3042_s1 + $0x2f8] sm:$0xff]   ;;  %v2353_v28 = vld [vmem:[%s3042_s1 + $0x268] sm:$0xff]  }
  0x17   :  { %v2343_v16 = vld [vmem:[%s3042_s1 + $0x100] sm:$0xff]   ;;  %v2347_v21 = vld [vmem:[%s3042_s1 + $0x238] sm:$0xff]   ;;  %v2365_v40 = vld [vmem:[%s3042_s1 + $0x250] sm:$0xff]  }
  0x18   :  { %2024 = vmatpush3.bf16.msra.mxu0 %v2302_v22  ;;  %v2344_v17 = vld [vmem:[%s3042_s1 + $0x180] sm:$0xff]   ;;  %v2348_v22 = vld [vmem:[%s3042_s1 + $0x2b8] sm:$0xff]   ;;  %v2366_v42 = vld [vmem:[%s3042_s1 + $0x2d0] sm:$0xff]  }
  0x19   :  { %2046 = vmatpush3.bf16.msra.mxu1 %v2303_v23  ;;  %2025 = vmatprep.subr.bf16.mxu0 %v2304_v24  ;;  %v347_v23 = vcombine.high %v331_v18, %v331_v18  ;;  %v2349_v24 = vld [vmem:[%s3042_s1 + $0x270] sm:$0xff]   ;;  %v2358_v33 = vld [vmem:[%s3042_s1 + $0x2e0] sm:$0xff]   ;;  %v2361_v36 = vld [vmem:[%s3042_s1 + $0x258] sm:$0xff]  }
  0x1a   :  { %2047 = vmatprep.subr.bf16.mxu1 %v2305_v25  ;;  %v2350_v25 = vld [vmem:[%s3042_s1 + $0x2f0] sm:$0xff]   ;;  %v2359_v34 = vld [vmem:[%s3042_s1 + $0x220] sm:$0xff]   ;;  %v2362_v37 = vld [vmem:[%s3042_s1 + $0x2d8] sm:$0xff]  }
  0x1b   :  { %v2364_v39 = vld [vmem:[%s3042_s1 + $0x298] sm:$0xff]   ;;  %v2367_v43 = vld [vmem:[%s3042_s1 + $0x210] sm:$0xff]   ;;  %v35_v46 = vld [vmem:[%s3041_s0 + $0x8] sm:$0xff] }
  0x1c   :  { %2026 = vmatpush3.bf16.msra.mxu0 %v2306_v26  ;;  %v2351_v26 = vld [vmem:[%s3042_s1 + $0x230] sm:$0xff]   ;;  %v357_v48 = vrot.slane %v35_v46, %v2615_v41 }
  0x1d   :  { %2048 = vmatpush3.bf16.msra.mxu1 %v2307_v27  ;;  %2027 = vmatprep.subr.bf16.mxu0 %v2308_v29  ;;  %v2352_v27 = vld [vmem:[%s3042_s1 + $0x2b0] sm:$0xff]   ;;  %v2354_v29 = vld [vmem:[%s3042_s1 + $0x2e8] sm:$0xff]  }
  0x1e   :  { %2049 = vmatprep.subr.bf16.mxu1 %v2309_v30  ;;  %v2355_v30 = vld [vmem:[%s3042_s1 + $0x228] sm:$0xff]   ;;  %v2368_v44 = vld [vmem:[%s3042_s1 + $0x290] sm:$0xff]  }
  0x20   :  { %2028 = vmatpush3.bf16.msra.mxu0 %v2310_v31  ;;  %v2356_v31 = vld [vmem:[%s3042_s1 + $0x2a8] sm:$0xff]  }
  0x21   :  { %2050 = vmatpush3.bf16.msra.mxu1 %v2311_v32  ;;  %2057 = vmatprep.subr.bf16.mxu0 %v2313_v35  ;;  %v2357_v32 = vld [vmem:[%s3042_s1 + $0x260] sm:$0xff]  }
  0x22   :  { %2079 = vmatprep.subr.bf16.mxu1 %v2314_v38  ;;  %v2360_v35 = vld [vmem:[%s3042_s1 + $0x2a0] sm:$0xff]   ;;  %v2363_v38 = vld [vmem:[%s3042_s1 + $0x218] sm:$0xff]  }
  0x23   :  { %1216 = vmatmul.mubr.bf16.vlgmr.msra.gmra.mxu0 %v324_v45  ;;  %v2369_v45 = vld [vmem:[%s3042_s1 + $0x248] sm:$0xff]  }
  0x24   :  { %2058 = vmatpush3.bf16.msra.mxu0 %v2315_v47  ;;  %1256 = vmatmul.mubr.bf16.vlgmr.msra.gmra.mxu1 %v346_v51  ;;  %v2370_v47 = vld [vmem:[%s3042_s1 + $0x2c8] sm:$0xff]  }
  0x25   :  { %2059 = vmatprep.subr.bf16.mxu0 %v2317_v52  ;;  %2080 = vmatpush3.bf16.msra.mxu1 %v2316_v49  ;;  %v350_v49 = vcombine.high %v35_v46, %v35_v46  ;;  %v2372_v51 = vld [vmem:[%s3042_s1 + $0x288] sm:$0xff]   ;;  %v365_v52 = vcombine.high %v357_v48, %v357_v48 }
  0x26   :  { %1295 = vmatprep.mubr.bf16.mxu0 %v345_v50  ;;  %2081 = vmatprep.subr.bf16.mxu1 %v2318_v54  ;;  %v2371_v50 = vld [vmem:[%s3042_s1 + $0x208] sm:$0xff]   ;;  %v2373_v54 = vld [vmem:[%s3042_s1 + $0x240] sm:$0xff]  }
  0x27   :  { %1335 = vmatprep.mubr.bf16.mxu1 %v349_v56  ;;  %v2807_v53 = vrot.slane %v350_v49, %v2615_v41  ;;  %v387_v56 = vrot.slane %v365_v52, %v2615_v41 }
  0x28   :  { %2060 = vmatpush3.bf16.msra.mxu0 %v2319_v55  ;;  %v2374_v55 = vld [vmem:[%s3042_s1 + $0x2c0] sm:$0xff]  }
  0x29   :  { %2061 = vmatprep.subr.bf16.mxu0 %v2321_v58  ;;  %2082 = vmatpush3.bf16.msra.mxu1 %v2320_v57  ;;  %v366_v57 = vcombine.high %v2807_v53, %v2807_v53  ;;  %v2375_v58 = vld [vmem:[%s3042_s1 + $0x200] sm:$0xff]  }
  0x2a   :  { %2083 = vmatprep.subr.bf16.mxu1 %v2322_v59  ;;  %v2376_v59 = vld [vmem:[%s3042_s1 + $0x280] sm:$0xff]  }
  0x2c   :  { %2062 = vmatpush3.bf16.msra.mxu0 %v2323_v60  ;;  %v397_v60 = vcombine.high %v387_v56, %v387_v56 }
  0x2d   :  { %2063 = vmatprep.subr.bf16.mxu0 %v2325_v62  ;;  %2084 = vmatpush3.bf16.msra.mxu1 %v2324_v61  ;;  %v373_v61 = vrot.slane %v357_v48, %v2615_v41  ;;  %v2377_v62 = vld [vmem:[%s3042_s1 + $0x378] sm:$0xff]  }
  0x2e   :  { %2085 = vmatprep.subr.bf16.mxu1 %v2326_v63  ;;  %v2378_v63 = vld [vmem:[%s3042_s1 + $0x3f8] sm:$0xff]  }
  0x30   :  { %2064 = vmatpush3.bf16.msra.mxu0 %v2327_v0  ;;  %v394_v0 = vrot.slane %v366_v57, %v2615_v41 }
  0x31   :  { %2065 = vmatprep.subr.bf16.mxu0 %v2329_v2  ;;  %2086 = vmatpush3.bf16.msra.mxu1 %v2328_v1  ;;  %v2379_v1 = vld [vmem:[%s3042_s1 + $0x338] sm:$0xff]  }
  0x32   :  { %2087 = vmatprep.subr.bf16.mxu1 %v2330_v3  ;;  %v2380_v2 = vld [vmem:[%s3042_s1 + $0x3b8] sm:$0xff]   ;;  %v395_v3 = vcombine.high %v373_v61, %v373_v61 }
  0x34   :  { %2066 = vmatpush3.bf16.msra.mxu0 %v2331_v4  ;;  %v2381_v4 = vld [vmem:[%s3042_s1 + $0x370] sm:$0xff]  }
  0x35   :  { %2067 = vmatprep.subr.bf16.mxu0 %v2333_v6  ;;  %2088 = vmatpush3.bf16.msra.mxu1 %v2332_v5  ;;  %v2382_v5 = vld [vmem:[%s3042_s1 + $0x3f0] sm:$0xff]   ;;  %v398_v6 = vcombine.high %v394_v0, %v394_v0 }
  0x36   :  { %2089 = vmatprep.subr.bf16.mxu1 %v2334_v7  ;;  %v2383_v7 = vld [vmem:[%s3042_s1 + $0x330] sm:$0xff]  }
  0x38   :  { %2068 = vmatpush3.bf16.msra.mxu0 %v2335_v8  ;;  %v2384_v8 = vld [vmem:[%s3042_s1 + $0x3b0] sm:$0xff]  }
  0x39   :  { %2069 = vmatprep.subr.bf16.mxu0 %v2337_v10  ;;  %2090 = vmatpush3.bf16.msra.mxu1 %v2336_v9  ;;  %v2385_v9 = vld [vmem:[%s3042_s1 + $0x368] sm:$0xff]  }
  0x3a   :  { %2091 = vmatprep.subr.bf16.mxu1 %v2338_v11  ;;  %v2386_v10 = vld [vmem:[%s3042_s1 + $0x3e8] sm:$0xff]  }
  0x3b   :  { %v2387_v11 = vld [vmem:[%s3042_s1 + $0x328] sm:$0xff]  }
  0x3c   :  { %2070 = vmatpush3.bf16.msra.mxu0 %v2339_v12  ;;  %v2388_v12 = vld [vmem:[%s3042_s1 + $0x3a8] sm:$0xff]  }
  0x3d   :  { %2071 = vmatprep.subr.bf16.mxu0 %v2341_v14  ;;  %2092 = vmatpush3.bf16.msra.mxu1 %v2340_v13  ;;  %v2389_v13 = vld [vmem:[%s3042_s1 + $0x360] sm:$0xff]  }
  0x3e   :  { %2093 = vmatprep.subr.bf16.mxu1 %v2342_v15  ;;  %v2390_v14 = vld [vmem:[%s3042_s1 + $0x3e0] sm:$0xff]  }
  0x3f   :  { %v2391_v15 = vld [vmem:[%s3042_s1 + $0x320] sm:$0xff]  }
  0x40   :  { %2072 = vmatpush3.bf16.msra.mxu0 %v2343_v16  ;;  %v2392_v16 = vld [vmem:[%s3042_s1 + $0x3a0] sm:$0xff]  }
  0x41   :  { %2101 = vmatprep.subr.bf16.mxu0 %v2345_v19  ;;  %2094 = vmatpush3.bf16.msra.mxu1 %v2344_v17  ;;  %v2393_v17 = vld [vmem:[%s3042_s1 + $0x358] sm:$0xff]  }
  0x42   :  { %2123 = vmatprep.subr.bf16.mxu1 %v2346_v20  ;;  %v2395_v19 = vld [vmem:[%s3042_s1 + $0x318] sm:$0xff]  }
  0x43   :  { %1296 = vmatmul.mubr.bf16.vlgmr.msra.gmra.mxu0 %v331_v18  ;;  %v2394_v18 = vld [vmem:[%s3042_s1 + $0x3d8] sm:$0xff]  }
  0x44   :  { %2102 = vmatpush3.bf16.msra.mxu0 %v2347_v21  ;;  %1336 = vmatmul.mubr.bf16.vlgmr.msra.gmra.mxu1 %v347_v23  ;;  %v2396_v20 = vld [vmem:[%s3042_s1 + $0x398] sm:$0xff]   ;;  %v2397_v21 = vld [vmem:[%s3042_s1 + $0x350] sm:$0xff]  }
  0x45   :  { %2103 = vmatprep.subr.bf16.mxu0 %v2349_v24  ;;  %2124 = vmatpush3.bf16.msra.mxu1 %v2348_v22  ;;  %v2398_v22 = vld [vmem:[%s3042_s1 + $0x3d0] sm:$0xff]  }
  0x46   :  { %2125 = vmatprep.subr.bf16.mxu1 %v2350_v25  ;;  %1375 = vmatprep.mubr.bf16.mxu0 %v387_v56  ;;  %v2399_v23 = vld [vmem:[%s3042_s1 + $0x310] sm:$0xff]   ;;  %v2401_v25 = vld [vmem:[%s3042_s1 + $0x348] sm:$0xff]  }
  0x47   :  { %1415 = vmatprep.mubr.bf16.mxu1 %v397_v60  ;;  %v2400_v24 = vld [vmem:[%s3042_s1 + $0x390] sm:$0xff]  }
  0x48   :  { %2104 = vmatpush3.bf16.msra.mxu0 %v2351_v26  ;;  %v2402_v26 = vld [vmem:[%s3042_s1 + $0x3c8] sm:$0xff]  }
  0x49   :  { %2105 = vmatprep.subr.bf16.mxu0 %v2353_v28  ;;  %2126 = vmatpush3.bf16.msra.mxu1 %v2352_v27  ;;  %v2403_v27 = vld [vmem:[%s3042_s1 + $0x308] sm:$0xff]   ;;  %v2405_v28 = vld [vmem:[%s3042_s1 + $0x340] sm:$0xff]  }
  0x4a   :  { %2127 = vmatprep.subr.bf16.mxu1 %v2354_v29  ;;  %v2404_v29 = vld [vmem:[%s3042_s1 + $0x388] sm:$0xff]  }
  0x4c   :  { %2106 = vmatpush3.bf16.msra.mxu0 %v2355_v30  ;;  %v2406_v30 = vld [vmem:[%s3042_s1 + $0x3c0] sm:$0xff]  }
  0x4d   :  { %2107 = vmatprep.subr.bf16.mxu0 %v2357_v32  ;;  %2128 = vmatpush3.bf16.msra.mxu1 %v2356_v31  ;;  %v2407_v31 = vld [vmem:[%s3042_s1 + $0x300] sm:$0xff]  }
  0x4e   :  { %2129 = vmatprep.subr.bf16.mxu1 %v2358_v33  ;;  %v2408_v32 = vld [vmem:[%s3042_s1 + $0x380] sm:$0xff]   ;;  %v380_v33 = vrot.slane %v2807_v53, %v2615_v41 }
  0x50   :  { %2108 = vmatpush3.bf16.msra.mxu0 %v2359_v34  ;;  %v396_v34 = vcombine.high %v380_v33, %v380_v33 }
  0x51   :  { %2109 = vmatprep.subr.bf16.mxu0 %v2361_v36  ;;  %2130 = vmatpush3.bf16.msra.mxu1 %v2360_v35 }
  0x52   :  { %2131 = vmatprep.subr.bf16.mxu1 %v2362_v37 }
  0x54   :  { %2110 = vmatpush3.bf16.msra.mxu0 %v2363_v38 }
  0x55   :  { %2111 = vmatprep.subr.bf16.mxu0 %v2365_v40  ;;  %2132 = vmatpush3.bf16.msra.mxu1 %v2364_v39 }
  0x56   :  { %2133 = vmatprep.subr.bf16.mxu1 %v2366_v42 }
  0x58   :  { %2112 = vmatpush3.bf16.msra.mxu0 %v2367_v43 }
  0x59   :  { %2113 = vmatprep.subr.bf16.mxu0 %v2369_v45  ;;  %2134 = vmatpush3.bf16.msra.mxu1 %v2368_v44 }
  0x5a   :  { %2135 = vmatprep.subr.bf16.mxu1 %v2370_v47 }
  0x5c   :  { %2114 = vmatpush3.bf16.msra.mxu0 %v2371_v50 }
  0x5d   :  { %2115 = vmatprep.subr.bf16.mxu0 %v2373_v54  ;;  %2136 = vmatpush3.bf16.msra.mxu1 %v2372_v51 }
  0x5e   :  { %2137 = vmatprep.subr.bf16.mxu1 %v2374_v55 }
  0x60   :  { %2116 = vmatpush3.bf16.msra.mxu0 %v2375_v58 }
  0x61   :  { %2145 = vmatprep.subr.bf16.mxu0 %v2377_v62  ;;  %2138 = vmatpush3.bf16.msra.mxu1 %v2376_v59 }
  0x62   :  { %2167 = vmatprep.subr.bf16.mxu1 %v2378_v63 }
  0x63   :  { %1376 = vmatmul.mubr.bf16.vlgmr.msra.gmra.mxu0 %v373_v61 }
  0x64   :  { %2146 = vmatpush3.bf16.msra.mxu0 %v2379_v1  ;;  %1455 = vmatprep.mubr.bf16.mxu0 %v394_v0 }
  0x65   :  { %1416 = vmatmul.mubr.bf16.vlgmr.msra.gmra.mxu1 %v395_v3  ;;  %2147 = vmatprep.subr.bf16.mxu0 %v2381_v4 }
  0x66   :  { %2168 = vmatpush3.bf16.msra.mxu1 %v2380_v2  ;;  %1495 = vmatprep.mubr.bf16.mxu1 %v398_v6 }
  0x67   :  { %2169 = vmatprep.subr.bf16.mxu1 %v2382_v5 }
  0x68   :  { %2148 = vmatpush3.bf16.msra.mxu0 %v2383_v7 }
  0x69   :  { %2149 = vmatprep.subr.bf16.mxu0 %v2385_v9 }
  0x6a   :  { %2170 = vmatpush3.bf16.msra.mxu1 %v2384_v8 }
  0x6b   :  { %2171 = vmatprep.subr.bf16.mxu1 %v2386_v10 }
  0x6c   :  { %2150 = vmatpush3.bf16.msra.mxu0 %v2387_v11 }
  0x6d   :  { %2151 = vmatprep.subr.bf16.mxu0 %v2389_v13 }
  0x6e   :  { %2172 = vmatpush3.bf16.msra.mxu1 %v2388_v12 }
  0x6f   :  { %2173 = vmatprep.subr.bf16.mxu1 %v2390_v14 }
  0x70   :  { %2152 = vmatpush3.bf16.msra.mxu0 %v2391_v15 }
  0x71   :  { %2153 = vmatprep.subr.bf16.mxu0 %v2393_v17 }
  0x72   :  { %2174 = vmatpush3.bf16.msra.mxu1 %v2392_v16 }
  0x73   :  { %2175 = vmatprep.subr.bf16.mxu1 %v2394_v18 }
  0x74   :  { %2154 = vmatpush3.bf16.msra.mxu0 %v2395_v19 }
  0x75   :  { %2155 = vmatprep.subr.bf16.mxu0 %v2397_v21 }
  0x76   :  { %2176 = vmatpush3.bf16.msra.mxu1 %v2396_v20 }
  0x77   :  { %2177 = vmatprep.subr.bf16.mxu1 %v2398_v22 }
  0x78   :  { %2156 = vmatpush3.bf16.msra.mxu0 %v2399_v23 }
  0x79   :  { %2157 = vmatprep.subr.bf16.mxu0 %v2401_v25 }
  0x7a   :  { %2178 = vmatpush3.bf16.msra.mxu1 %v2400_v24 }
  0x7b   :  { %2179 = vmatprep.subr.bf16.mxu1 %v2402_v26 }
  0x7c   :  { %2158 = vmatpush3.bf16.msra.mxu0 %v2403_v27 }
  0x7d   :  { %2159 = vmatprep.subr.bf16.mxu0 %v2405_v28 }
  0x7e   :  { %2180 = vmatpush3.bf16.msra.mxu1 %v2404_v29 }
  0x7f   :  { %2181 = vmatprep.subr.bf16.mxu1 %v2406_v30 }
  0x80   :  { %2160 = vmatpush3.bf16.msra.mxu0 %v2407_v31 }
  0x82   :  { %2182 = vmatpush3.bf16.msra.mxu1 %v2408_v32 }
  0x83   :  { %1456 = vmatmul.mubr.bf16.vlgmr.msra.gmra.mxu0 %v380_v33 }
  0x85   :  { %1496 = vmatmul.mubr.bf16.vlgmr.msra.gmra.mxu1 %v396_v34 }
  0x86   :  { %14 = vsyncpa [#allocation3], 0  ;;  %v2410_v35 = vld [vmem:[%s3044_s3 + $0x38] sm:$0xff]   ;;  %v2457_v36 = vmov 0.0   ;;  %v2411_v41 = vld [vmem:[%s3044_s3 + $0x30] sm:$0xff]   ;;  %vm2458_vm0 = vmmov 0  }
  0x87   :  { %2216 = vmatprep.subr.bf16.mxu0 %v2457_v36  ;;  %2236 = vmatprep.subr.bf16.mxu1 %v2457_v36  ;;  %v2412_v37 = vld [vmem:[%s3044_s3 + $0x28] sm:$0xff]   ;;  %v2413_v38 = vld [vmem:[%s3044_s3 + $0x20] sm:$0xff]   ;;  %v2414_v39 = vld [vmem:[%s3044_s3 + $0x18] sm:$0xff]   ;;  %s2459_s17 = smov [#allocation2]  }
  0x88   :  { %2217 = vmatpush3.bf16.msra.mxu0 %v2410_v35  ;;  %v2415_v40 = vld [vmem:[%s3044_s3 + $0x10] sm:$0xff]   ;;  %v2416_v42 = vld [vmem:[%s3044_s3 + $0x8] sm:$0xff]   ;;  %v2417_v43 = vld [vmem:[%s3044_s3] sm:$0xff]   ;;  %2232 = vmatprep.mubr.msk.bf16.mxu0 %vm2458_vm0, %v2457_v36 }
  0x89   :  { %2218 = vmatprep.subr.bf16.mxu0 %v2457_v36  ;;  %v2418_v44 = vld [vmem:[%s3046_s5 + $0x38] sm:$0xff]   ;;  %2252 = vmatprep.mubr.msk.bf16.mxu1 %vm2458_vm0, %v2457_v36  ;;  %v2419_v45 = vld [vmem:[%s3046_s5 + $0x30] sm:$0xff]   ;;  %v2420_v46 = vld [vmem:[%s3046_s5 + $0x28] sm:$0xff]  }
  0x8a   :  { %2237 = vmatpush3.bf16.msra.mxu1 %v2418_v44  ;;  %v2421_v47 = vld [vmem:[%s3046_s5 + $0x20] sm:$0xff]   ;;  %v2422_v48 = vld [vmem:[%s3046_s5 + $0x18] sm:$0xff]   ;;  %v2423_v49 = vld [vmem:[%s3046_s5 + $0x10] sm:$0xff]  }
  0x8b   :  { %2238 = vmatprep.subr.bf16.mxu1 %v2457_v36  ;;  %v1857_v52 = vld [vmem:[%s3043_s2] ss:$0 sm:$0xff]  ;;  %v2430_v44 = vld [vmem:[%s3048_s7 + $0x18] sm:$0xff]   ;;  %s1849_s2 = sshll.u32 %s2459_s17, 4  ;;  %s1850_s2 = int_to_ptr.vmem [resolvable:$true] %s1849_s2 }
  0x8c   :  { %2219 = vmatpush3.bf16.msra.mxu0 %v2411_v41  ;;  %p2439_p1 = scmp.lt.s32.totalorder %s1850_s2, %s1850_s2 }
  0x8d   :  { %2220 = vmatprep.subr.bf16.mxu0 %v2457_v36 }
  0x8e   :  { %2239 = vmatpush3.bf16.msra.mxu1 %v2419_v45  ;;  %v2431_v45 = vld [vmem:[%s3048_s7 + $0x10] sm:$0xff]  }
  0x8f   :  { %2240 = vmatprep.subr.bf16.mxu1 %v2457_v36 }
  0x90   :  { %2221 = vmatpush3.bf16.msra.mxu0 %v2412_v37  ;;  %v2424_v37 = vld [vmem:[%s3046_s5 + $0x8] sm:$0xff]  }
  0x91   :  { %2222 = vmatprep.subr.bf16.mxu0 %v2457_v36 }
  0x92   :  { %2241 = vmatpush3.bf16.msra.mxu1 %v2420_v46  ;;  %v1986_v46 = vld [vmem:[%s3045_s4] ss:$0 sm:$0xff] }
  0x93   :  { %2242 = vmatprep.subr.bf16.mxu1 %v2457_v36 }
  0x94   :  { %2223 = vmatpush3.bf16.msra.mxu0 %v2413_v38  ;;  %v2425_v38 = vld [vmem:[%s3046_s5] sm:$0xff]  }
  0x95   :  { %2224 = vmatprep.subr.bf16.mxu0 %v2457_v36 }
  0x96   :  { %2243 = vmatpush3.bf16.msra.mxu1 %v2421_v47 }
  0x97   :  { %2244 = vmatprep.subr.bf16.mxu1 %v2457_v36 }
  0x98   :  { %2225 = vmatpush3.bf16.msra.mxu0 %v2414_v39  ;;  %v2426_v39 = vld [vmem:[%s3048_s7 + $0x38] sm:$0xff]  }
  0x99   :  { %2226 = vmatprep.subr.bf16.mxu0 %v2457_v36 }
  0x9a   :  { %2245 = vmatpush3.bf16.msra.mxu1 %v2422_v48 }
  0x9b   :  { %2246 = vmatprep.subr.bf16.mxu1 %v2457_v36 }
  0x9c   :  { %2227 = vmatpush3.bf16.msra.mxu0 %v2415_v40  ;;  %v2427_v40 = vld [vmem:[%s3048_s7 + $0x30] sm:$0xff]  }
  0x9d   :  { %2228 = vmatprep.subr.bf16.mxu0 %v2457_v36 }
  0x9e   :  { %2247 = vmatpush3.bf16.msra.mxu1 %v2423_v49 }
  0x9f   :  { %2248 = vmatprep.subr.bf16.mxu1 %v2457_v36 }
  0xa0   :  { %2229 = vmatpush3.bf16.msra.mxu0 %v2416_v42  ;;  %v2428_v42 = vld [vmem:[%s3048_s7 + $0x28] sm:$0xff]  }
  0xa1   :  { %2230 = vmatprep.subr.bf16.mxu0 %v2457_v36 }
  0xa2   :  { %2249 = vmatpush3.bf16.msra.mxu1 %v2424_v37 }
  0xa3   :  { %2250 = vmatprep.subr.bf16.mxu1 %v2457_v36 }
  0xa4   :  { %2231 = vmatpush3.bf16.msra.mxu0 %v2417_v43  ;;  %v2429_v43 = vld [vmem:[%s3048_s7 + $0x20] sm:$0xff]  }
  0xa5   :  { %2256 = vmatprep.subr.bf16.mxu0 %v2457_v36 }
  0xa6   :  { %2251 = vmatpush3.bf16.msra.mxu1 %v2425_v38 }
  0xe3   :  { %v2029_v50 = vpop.f32.mrf.mxu0 }
  0xe4   :  { %v2051_v51 = vpop.f32.mrf.mxu1 }
  0xe5   :  { %v2030_v53 = vpop.f32.mrf.mxu0 }
  0xe6   :  { %v2031_v54 = vadd.f32 %v2030_v53, %v2029_v50  ;;  %v2052_v55 = vpop.f32.mrf.mxu1 }
  0xe7   :  { %v2032_v56 = vpop.f32.mrf.mxu0  ;;  %v2053_v58 = vadd.f32 %v2052_v55, %v2051_v51  ;;  %v2433_v55 = vld [vmem:[%s3048_s7] sm:$0xff]  }
  0xe8   :  { %v1218_v57 = vadd.f32 %v2031_v54, %v1857_v52  ;;  %v2054_v59 = vpop.f32.mrf.mxu1  ;;  %v2432_v54 = vld [vmem:[%s3048_s7 + $0x8] sm:$0xff]   ;;  %v1995_v56 = vld [vmem:[%s3047_s6] ss:$0 sm:$0xff]  ;;  %s2434_s6 = scalar_lea.vmem %s1850_s2, 32 }
  0xe9   :  { %v2033_v60 = vpop.f32.mrf.mxu0  ;;  %p2435_p0 = scmp.ne.s32.totalorder %s1850_s2, %s2434_s6  ;;  %p2440_p2 = scmp.lt.s32.totalorder %s2434_s6, %s2434_s6 }
  0xea   :  { %v1258_v61 = vadd.f32 %v2053_v58, %v1218_v57  ;;  %v2055_v62 = vpop.f32.mrf.mxu1 }
  0xeb   :  { %p2441_p3 = por %p2440_p2, %p2439_p1 }
  0xed   :  { %p2442_p4 = pnand %p2441_p3, %p2435_p0 }
 0x103   :  { %v2073_v63 = vpop.f32.mrf.mxu0 }
 0x104   :  { %v2095_v0 = vpop.f32.mrf.mxu1 }
 0x105   :  { %v2074_v1 = vpop.f32.mrf.mxu0 }
 0x106   :  { %v2096_v2 = vpop.f32.mrf.mxu1  ;;  %v2075_v15 = vadd.f32 %v2074_v1, %v2073_v63 }
 0x107   :  { %v2076_v3 = vpop.f32.mrf.mxu0  ;;  %v2097_v17 = vadd.f32 %v2096_v2, %v2095_v0 }
 0x108   :  { %v2098_v4 = vpop.f32.mrf.mxu1  ;;  %v1298_v16 = vadd.f32 %v2075_v15, %v1258_v61 }
 0x109   :  { %v2077_v5 = vpop.f32.mrf.mxu0 }
 0x10a   :  { %v2099_v6 = vpop.f32.mrf.mxu1  ;;  %v1338_v19 = vadd.f32 %v2097_v17, %v1298_v16 }
 0x123   :  { %v2117_v7 = vpop.f32.mrf.mxu0 }
 0x125   :  { %v2139_v8 = vpop.f32.mrf.mxu1  ;;  %v2118_v9 = vpop.f32.mrf.mxu0 }
 0x126   :  { %v2119_v18 = vadd.f32 %v2118_v9, %v2117_v7 }
 0x127   :  { %v2140_v10 = vpop.f32.mrf.mxu1  ;;  %v2120_v11 = vpop.f32.mrf.mxu0 }
 0x128   :  { %v1378_v20 = vadd.f32 %v2119_v18, %v1338_v19  ;;  %v2141_v21 = vadd.f32 %v2140_v10, %v2139_v8 }
 0x129   :  { %v2142_v12 = vpop.f32.mrf.mxu1  ;;  %v2121_v13 = vpop.f32.mrf.mxu0 }
 0x12a   :  { %v1418_v25 = vadd.f32 %v2141_v21, %v1378_v20 }
 0x12b   :  { %v2143_v14 = vpop.f32.mrf.mxu1 }
 0x143   :  { %v2161_v22 = vpop.f32.mrf.mxu0 }
 0x145   :  { %v2183_v23 = vpop.f32.mrf.mxu1  ;;  %v2162_v24 = vpop.f32.mrf.mxu0 }
 0x146   :  { %v2163_v26 = vadd.f32 %v2162_v24, %v2161_v22 }
 0x147   :  { %v2184_v27 = vpop.f32.mrf.mxu1  ;;  %v2164_v28 = vpop.f32.mrf.mxu0 }
 0x148   :  { %v1458_v29 = vadd.f32 %v2163_v26, %v1418_v25  ;;  %v2185_v30 = vadd.f32 %v2184_v27, %v2183_v23 }
 0x149   :  { %v2186_v31 = vpop.f32.mrf.mxu1  ;;  %v2165_v32 = vpop.f32.mrf.mxu0 }
 0x14a   :  { %v1498_v33 = vadd.f32 %v2185_v30, %v1458_v29 }
 0x14b   :  { %v2187_v34 = vpop.f32.mrf.mxu1 }
 0x14c   :  { %v1503_v35 = vmax.f32 %v1498_v33, 0.0 }
 0x14e   :  { %v1504_v41 = vpack.c.bf16 %v1503_v35, %v1503_v35 }
 0x150   :  { %2233 = vmatmul.mubr.bf16.vlgmr.msra.gmra.mxu0 %v1504_v41 }
 0x151   :  { %2272 = vmatprep.mubr.msk.bf16.mxu0 %vm2458_vm0, %v2457_v36  ;;  %2257 = vmatpush3.bf16.msra.mxu0 %v2426_v39 }
 0x152   :  { %2258 = vmatprep.subr.bf16.mxu0 %v2457_v36 }
 0x155   :  { %2259 = vmatpush3.bf16.msra.mxu0 %v2427_v40 }
 0x156   :  { %2260 = vmatprep.subr.bf16.mxu0 %v2457_v36 }
 0x159   :  { %2261 = vmatpush3.bf16.msra.mxu0 %v2428_v42 }
 0x15a   :  { %2262 = vmatprep.subr.bf16.mxu0 %v2457_v36 }
 0x15d   :  { %2263 = vmatpush3.bf16.msra.mxu0 %v2429_v43 }
 0x15e   :  { %2264 = vmatprep.subr.bf16.mxu0 %v2457_v36 }
 0x161   :  { %2265 = vmatpush3.bf16.msra.mxu0 %v2430_v44 }
 0x162   :  { %2266 = vmatprep.subr.bf16.mxu0 %v2457_v36 }
 0x165   :  { %2267 = vmatpush3.bf16.msra.mxu0 %v2431_v45 }
 0x166   :  { %2268 = vmatprep.subr.bf16.mxu0 %v2457_v36 }
 0x169   :  { %2269 = vmatpush3.bf16.msra.mxu0 %v2432_v54 }
 0x16a   :  { %2270 = vmatprep.subr.bf16.mxu0 %v2457_v36  ;;  %v2004_v36 = vld [vmem:[%s3049_s8] ss:$0 sm:$0xff] }
 0x16d   :  { %2271 = vmatpush3.bf16.msra.mxu0 %v2433_v55 }
 0x210   :  { %v1610_v47 = vpop.f32.mrf.mxu0 }
 0x211   :  { %v1611_v48 = vadd.f32 %v1986_v46, %v1610_v47 }
 0x212   :  { %v2234_v49 = vpop.f32.mrf.mxu0 }
 0x213   :  { %v1616_v50 = vmax.f32 %v1611_v48, 0.0 }
 0x214   :  { %v1613_v51 = vpop.f32.mrf.mxu0 }
 0x215   :  { %v1617_v52 = vpack.c.bf16 %v1616_v50, %v1616_v50 }
 0x216   :  { %v2235_v53 = vpop.f32.mrf.mxu0 }
 0x217   :  { %2253 = vmatmul.mubr.bf16.vlgmr.msra.gmra.mxu1 %v1617_v52 }
 0x2d7   :  { %v1723_v57 = vpop.f32.mrf.mxu1 }
 0x2d8   :  { %v1724_v58 = vadd.f32 %v1995_v56, %v1723_v57 }
 0x2d9   :  { %v2254_v59 = vpop.f32.mrf.mxu1 }
 0x2da   :  { %v1729_v60 = vmax.f32 %v1724_v58, 0.0 }
 0x2db   :  { %v1726_v61 = vpop.f32.mrf.mxu1 }
 0x2dc   :  { %v1730_v62 = vpack.c.bf16 %v1729_v60, %v1729_v60 }
 0x2dd   :  { %v2255_v63 = vpop.f32.mrf.mxu1 }
 0x2de   :  { %2273 = vmatmul.mubr.bf16.vlgmr.msra.gmra.mxu0 %v1730_v62 }
 0x39e   :  { %v1836_v0 = vpop.f32.mrf.mxu0 }
 0x39f   :  { %v1837_v1 = vadd.f32 %v2004_v36, %v1836_v0 }
 0x3a0   :  { %v2274_v2 = vpop.f32.mrf.mxu0 }
 0x3a1   :  { %1842 = vst [vmem:[#allocation2] sm:$0x3] %v1837_v1 }
 0x3a2   :  { %v1839_v3 = vpop.f32.mrf.mxu0 }
 0x3a3   :  { %2445 = shalt.err (!%p2442_p4)
}
 0x3a4   :  { %1852 = dma.vmem_to_hbm [thread:$0]  %s1850_s2, 32, %s3050_s9, [#allocation3]   ;;  %v2275_v4 = vpop.f32.mrf.mxu0 }
 0x3a5   :  { %2454 = dma.done.wait [#allocation3], 32  }
 0x3a6   :  { %2455 = vsyncadd [#allocation3], 4294967264 }
 0x3a7   :  { %1856 = vsyncpa [#allocation3], 1 }

</bundles_post_ra>
